<compile_context>
chip_gen: v6e
topology: v6e:2x2x1
jax: 0.10.0
libtpu: 0.0.40
codegen_flags: <defaults>
</compile_context>

<pallas_src>
import functools

import jax
import jax.numpy as jnp
from jax.experimental import pallas as pl
from jax.experimental.pallas import tpu as pltpu  # noqa: F401  (TPU backend assumed)


# ---------------------------------------------------------------------------
# Fused encoder + VQ + decoder kernel
# ---------------------------------------------------------------------------
def _fused_vqvae_kernel(
    xc_ref, w1_ref, b1_ref, w2_ref, b2_ref, w3_ref, b3_ref,
    er1_ref, er2_ref, wpre_ref, bpre_ref, embt_ref, emb_ref,
    dw1_ref, db1_ref, dr1_ref, dr2_ref, wt1_ref, bt1_ref, wt2_ref, bt2_ref,
    recon_ref, loss_ref, perp_ref, idx_ref, enc_ref,
    *, L4, num_res, num_embeddings, commitment_cost):
    f32 = jnp.float32
    N = idx_ref.shape[0]                      # B * L4 rows (batch folded into M)

    # per-batch boundary masks (rows are ordered (b, m), block length L4)
    row = jax.lax.broadcasted_iota(jnp.int32, (N, 1), 0) % L4
    is_first = row == 0
    is_last = row == (L4 - 1)

    def shift_dn(x):                          # x[m-1], zero at each batch start
        sh = jnp.concatenate([jnp.zeros((1, x.shape[1]), f32), x[:-1, :]], axis=0)
        return jnp.where(is_first, 0.0, sh)

    def shift_up(x):                          # x[m+1], zero at each batch end
        sh = jnp.concatenate([x[1:, :], jnp.zeros((1, x.shape[1]), f32)], axis=0)
        return jnp.where(is_last, 0.0, sh)

    def mm(a, w):
        return jnp.dot(a, w, preferred_element_type=f32)

    def conv_k3(x, wf, bias=None):            # k=3, s=1, p=1 as one im2col matmul
        cols = jnp.concatenate([shift_dn(x), x, shift_up(x)], axis=1)
        y = mm(cols, wf)
        return y if bias is None else y + bias

    def res_stack(x, w1s_ref, w2s_ref):       # Residual: x + 1x1(relu(k3(relu(x))))
        for i in range(num_res):
            a = jnp.maximum(x, 0.0)
            h = jnp.maximum(conv_k3(a, w1s_ref[i]), 0.0)
            x = x + mm(h, w2s_ref[i])
        return jnp.maximum(x, 0.0)            # final ReLU of ResidualStack

    # ---------------- Encoder ----------------
    # conv1 (1->H/2, k4 s2 p1): wrapper delivered phase-stacked im2col rows
    h_all = jnp.maximum(mm(xc_ref[...], w1_ref[...]) + b1_ref[...], 0.0)   # (2N, C1)
    h1e = h_all[:N, :]                        # conv1 output at even positions
    h1o = h_all[N:, :]                        # conv1 output at odd positions
    # conv2 (H/2->H, k4 s2 p1) on the phase pair -> stride-1 im2col
    cols2 = jnp.concatenate([shift_dn(h1o), h1e, h1o, shift_up(h1e)], axis=1)
    x = jnp.maximum(mm(cols2, w2_ref[...]) + b2_ref[...], 0.0)             # (N, H)
    # conv3 (k3 s1 p1), residual stack, pre-VQ 1x1 conv
    x = conv_k3(x, w3_ref[...], b3_ref[...])
    x = res_stack(x, er1_ref, er2_ref)
    z = mm(x, wpre_ref[...]) + bpre_ref[...]                               # (N, E)

    # ---------------- Vector quantizer ----------------
    embt = embt_ref[...]                       # (E, NE) pre-transposed codebook
    emb = emb_ref[...]                         # (NE, E)
    x2 = jnp.sum(z * z, axis=1, keepdims=True)             # (N, 1)
    e2 = jnp.sum(embt * embt, axis=0, keepdims=True)       # (1, NE) -- VPU/XLU, no matmul
    d = x2 + e2 - 2.0 * mm(z, embt)                         # (N, NE) distances
    dmin = jnp.min(d, axis=1, keepdims=True)
    col = jax.lax.broadcasted_iota(jnp.int32, d.shape, 1)
    idx = jnp.min(jnp.where(d <= dmin, col, num_embeddings),
                  axis=1, keepdims=True)                    # first argmin (N, 1)
    enc = (col == idx).astype(f32)                          # one-hot (N, NE)
    q = mm(enc, emb)                                        # (N, E)

    idx_ref[...] = idx
    enc_ref[...] = enc
    # forward value: q_latent_loss == e_latent_loss == mse(q, z)
    mse = jnp.mean((q - z) ** 2)
    loss_ref[...] = jnp.full((1, 1), (1.0 + commitment_cost) * mse, f32)
    avg = jnp.mean(enc, axis=0, keepdims=True)
    perp_ref[...] = jnp.full((1, 1),
                             jnp.exp(-jnp.sum(avg * jnp.log(avg + 1e-10))), f32)
    # TODO(synk): straight-through estimator / detach semantics are forward-only;
    # a custom_vjp would be required to reproduce gradients.

    # ---------------- Decoder ----------------
    y = conv_k3(q, dw1_ref[...], db1_ref[...])              # conv1 (E->H, k3 s1 p1)
    y = res_stack(y, dr1_ref, dr2_ref)
    # conv_trans_1 (H -> H/2, k4 s2 p1) as polyphase: one matmul gives [even|odd]
    cols_t1 = jnp.concatenate([shift_dn(y), y, shift_up(y)], axis=1)       # (N, 3H)
    t1y = jnp.maximum(mm(cols_t1, wt1_ref[...]) + bt1_ref[...], 0.0)       # (N, 2*Ch)
    ch = t1y.shape[1] // 2
    a = t1y[:, :ch]                           # relu(y[2m])
    b = t1y[:, ch:]                           # relu(y[2m+1])
    # conv_trans_2 (H/2 -> 1, k4 s2 p1): 4 output phases packed on the lane axis
    cols_t2 = jnp.concatenate([shift_dn(b), a, b, shift_up(a)], axis=1)    # (N, 4*Ch)
    recon_ref[...] = mm(cols_t2, wt2_ref[...]) + bt2_ref[...]              # (N, 4)


# ---------------------------------------------------------------------------
# Wrapper: weight flattening, input im2col, single pallas_call
# ---------------------------------------------------------------------------
def vqvae_forward(X, params, *, commitment_cost):
    B, T = X.shape
    assert T % 4 == 0, "sequence length must be divisible by compression_factor=4"
    L4 = T // 4
    N = B * L4
    f32 = jnp.float32

    C1 = params["enc_conv1_w"].shape[2]       # H // 2
    H = params["enc_conv2_w"].shape[2]
    E = params["pre_vq_w"].shape[2]
    NE = params["embedding"].shape[0]
    Ch = params["dec_t1_w"].shape[2]          # H // 2
    RH = params["enc_res_w1"].shape[3]
    NRL = params["enc_res_w1"].shape[0]

    # --- im2col of the raw input for encoder conv1 (k4, s2, p1, Cin=1), split
    # into even/odd output phases so conv2's stride-2 becomes stride-1 in-kernel.
    Xp = jnp.pad(X, ((0, 0), (1, 1)))
    cols = jnp.stack([Xp[:, j::2][:, :T // 2] for j in range(4)], axis=-1)  # (B, T/2, 4)
    xc = jnp.concatenate([cols[:, 0::2, :].reshape(N, 4),
                          cols[:, 1::2, :].reshape(N, 4)], axis=0)          # (2N, 4)

    # --- flatten conv weights to im2col (K*Cin, Cout) layout, biases to (1, C)
    w1f = params["enc_conv1_w"].reshape(4, C1)
    b1 = params["enc_conv1_b"].reshape(1, C1)
    w2f = params["enc_conv2_w"].reshape(4 * C1, H)
    b2 = params["enc_conv2_b"].reshape(1, H)
    w3f = params["enc_conv3_w"].reshape(3 * H, H)
    b3 = params["enc_conv3_b"].reshape(1, H)
    er1 = params["enc_res_w1"].reshape(NRL, 3 * H, RH)
    er2 = params["enc_res_w2"].reshape(NRL, RH, H)
    wpre = params["pre_vq_w"].reshape(H, E)
    bpre = params["pre_vq_b"].reshape(1, E)
    emb = params["embedding"]                 # (NE, E)
    embt = emb.T                              # (E, NE) pre-transposed for distances
    dw1f = params["dec_conv1_w"].reshape(3 * E, H)
    db1 = params["dec_conv1_b"].reshape(1, H)
    dr1 = params["dec_res_w1"].reshape(NRL, 3 * H, RH)
    dr2 = params["dec_res_w2"].reshape(NRL, RH, H)

    # --- polyphase packing of ConvTranspose1d weights (equivalent-conv layout)
    # y[2m]   = w_eq[0] x[m-1] + w_eq[2] x[m]   + b
    # y[2m+1] = w_eq[1] x[m]   + w_eq[3] x[m+1] + b
    t1 = params["dec_t1_w"]                   # (4, H, Ch)
    zH = jnp.zeros((H, Ch), f32)
    wt1 = jnp.concatenate([
        jnp.concatenate([t1[0], zH], axis=1),       # rows multiplying x[m-1]
        jnp.concatenate([t1[2], t1[1]], axis=1),    # rows multiplying x[m]
        jnp.concatenate([zH, t1[3]], axis=1),       # rows multiplying x[m+1]
    ], axis=0)                                      # (3H, 2*Ch) -> [y_even | y_odd]
    bt1 = jnp.concatenate([params["dec_t1_b"], params["dec_t1_b"]]).reshape(1, 2 * Ch)

    # recon[4m+t]: t=0: B_dn w0 + A w2 ; t=1: A w1 + B w3 ;
    #              t=2: A w0 + B w2   ; t=3: B w1 + A_up w3
    # with A = relu(y_even), B = relu(y_odd); kernel columns = [B_dn | A | B | A_up]
    t2 = params["dec_t2_w"]                   # (4, Ch, 1)
    zc = jnp.zeros((Ch, 1), f32)
    wt2 = jnp.concatenate([
        jnp.concatenate([t2[0], zc, zc, zc], axis=1),        # B_dn rows
        jnp.concatenate([t2[2], t2[1], t2[0], zc], axis=1),  # A rows
        jnp.concatenate([zc, t2[3], t2[2], t2[1]], axis=1),  # B rows
        jnp.concatenate([zc, zc, zc, t2[3]], axis=1),        # A_up rows
    ], axis=0)                                               # (4*Ch, 4)
    bt2 = jnp.broadcast_to(params["dec_t2_b"].reshape(1, 1), (1, 4))

    kernel = functools.partial(
        _fused_vqvae_kernel, L4=L4, num_res=NRL,
        num_embeddings=NE, commitment_cost=commitment_cost)

    recon_blk, loss, perp, idx, enc = pl.pallas_call(
        kernel,
        out_shape=(
            jax.ShapeDtypeStruct((N, 4), f32),        # recon, lane-packed phases
            jax.ShapeDtypeStruct((1, 1), f32),        # vq loss
            jax.ShapeDtypeStruct((1, 1), f32),        # perplexity
            jax.ShapeDtypeStruct((N, 1), jnp.int32),  # encoding indices
            jax.ShapeDtypeStruct((N, NE), f32),       # one-hot encodings
        ),
    )(xc, w1f, b1, w2f, b2, w3f, b3, er1, er2, wpre, bpre, embt, emb,
      dw1f, db1, dr1, dr2, wt1, bt1, wt2, bt2)

    data_recon = recon_blk.reshape(B, T)      # rows (b, m), lanes t -> index 4m+t
    return (data_recon, loss[0, 0], perp[0, 0], emb, idx, enc)


# ---------------------------------------------------------------------------
# Deterministic synthetic parameter initialization
# ---------------------------------------------------------------------------
def init_params(key, *, block_hidden_size, num_residual_layers,
                res_hidden_size, embedding_dim, num_embeddings):
    H, RH, E, NE = block_hidden_size, res_hidden_size, embedding_dim, num_embeddings
    NRL = num_residual_layers
    ks = iter(jax.random.split(key, 32))

    def w(shape, scale=0.1):
        return scale * jax.random.normal(next(ks), shape, jnp.float32)

    p = {}
    # Encoder (cf=4): conv1 (1->H/2, k4 s2 p1), conv2 (H/2->H, k4 s2 p1), conv3 (H->H, k3 s1 p1)
    p["enc_conv1_w"], p["enc_conv1_b"] = w((4, 1, H // 2)), w((H // 2,))
    p["enc_conv2_w"], p["enc_conv2_b"] = w((4, H // 2, H)), w((H,))
    p["enc_conv3_w"], p["enc_conv3_b"] = w((3, H, H)), w((H,))
    p["enc_res_w1"] = w((NRL, 3, H, RH))      # k3 conv, no bias
    p["enc_res_w2"] = w((NRL, 1, RH, H))      # 1x1 conv, no bias
    p["pre_vq_w"], p["pre_vq_b"] = w((1, H, E)), w((E,))
    # Embedding uniform(-1/NE, 1/NE) as in the PyTorch module
    p["embedding"] = jax.random.uniform(next(ks), (NE, E), jnp.float32,
                                        -1.0 / NE, 1.0 / NE)
    # Decoder (cf=4): conv1 (E->H, k3 s1 p1), trans1 (H->H/2, k4 s2 p1), trans2 (H/2->1, k4 s2 p1)
    p["dec_conv1_w"], p["dec_conv1_b"] = w((3, E, H)), w((H,))
    p["dec_res_w1"] = w((NRL, 3, H, RH))
    p["dec_res_w2"] = w((NRL, 1, RH, H))
    # ConvTranspose weights stored in equivalent stride-1-conv layout
    # (for real PyTorch weights: w_eq[k, cin, cout] = W_pt[cin, cout, K-1-k]).
    p["dec_t1_w"], p["dec_t1_b"] = w((4, H, H // 2)), w((H // 2,))
    p["dec_t2_w"], p["dec_t2_b"] = w((4, H // 2, 1)), w((1,))
    return p


if __name__ == "__main__":
    B, T = 2, 64                    # sequence length divisible by compression_factor=4
    H, NRL, RH, E, NE = 32, 2, 16, 16, 64
    COMMITMENT_COST = 0.25

    params = init_params(jax.random.PRNGKey(0),
                         block_hidden_size=H, num_residual_layers=NRL,
                         res_hidden_size=RH, embedding_dim=E, num_embeddings=NE)
    X = jax.random.normal(jax.random.PRNGKey(0), (B, T), jnp.float32)

    fwd = jax.jit(vqvae_forward, static_argnames=("commitment_cost",))
    out = fwd(X, params, commitment_cost=COMMITMENT_COST)
    jax.block_until_ready(out)

    recon, vq_loss, perplexity, emb_w, enc_idx, encodings = out
    assert recon.shape == (B, T)
    assert enc_idx.shape == (B * (T // 4), 1)
    assert encodings.shape == (B * (T // 4), NE)
    print("KERNEL_OK")
</pallas_src>

<mosaic_0001>
module attributes {stable_mosaic.version = 11 : i64} {
  func.func @_fused_vqvae_kernel(%arg0: memref<64x4xf32, #tpu.memory_space<vmem>>, %arg1: memref<4x16xf32, #tpu.memory_space<vmem>>, %arg2: memref<1x16xf32, #tpu.memory_space<vmem>>, %arg3: memref<64x32xf32, #tpu.memory_space<vmem>>, %arg4: memref<1x32xf32, #tpu.memory_space<vmem>>, %arg5: memref<96x32xf32, #tpu.memory_space<vmem>>, %arg6: memref<1x32xf32, #tpu.memory_space<vmem>>, %arg7: memref<2x96x16xf32, #tpu.memory_space<vmem>>, %arg8: memref<2x16x32xf32, #tpu.memory_space<vmem>>, %arg9: memref<32x16xf32, #tpu.memory_space<vmem>>, %arg10: memref<1x16xf32, #tpu.memory_space<vmem>>, %arg11: memref<16x64xf32, #tpu.memory_space<vmem>>, %arg12: memref<64x16xf32, #tpu.memory_space<vmem>>, %arg13: memref<48x32xf32, #tpu.memory_space<vmem>>, %arg14: memref<1x32xf32, #tpu.memory_space<vmem>>, %arg15: memref<2x96x16xf32, #tpu.memory_space<vmem>>, %arg16: memref<2x16x32xf32, #tpu.memory_space<vmem>>, %arg17: memref<96x32xf32, #tpu.memory_space<vmem>>, %arg18: memref<1x32xf32, #tpu.memory_space<vmem>>, %arg19: memref<64x4xf32, #tpu.memory_space<vmem>>, %arg20: memref<1x4xf32, #tpu.memory_space<vmem>>, %arg21: memref<32x4xf32, #tpu.memory_space<vmem>>, %arg22: memref<1x1xf32, #tpu.memory_space<vmem>>, %arg23: memref<1x1xf32, #tpu.memory_space<vmem>>, %arg24: memref<32x1xi32, #tpu.memory_space<vmem>>, %arg25: memref<32x64xf32, #tpu.memory_space<vmem>>) attributes {dimension_semantics = [], scalar_prefetch = 0 : i64, scratch_operands = 0 : i64, tpu.core_type = #tpu.core_type<tc>} {
    %0 = tpu.iota {dimensions = array<i32: 0>} : vector<32x1xi32>
    %c16_i32 = arith.constant 16 : i32
    %c0_i32 = arith.constant 0 : i32
    %1 = arith.cmpi eq, %c16_i32, %c0_i32 : i32
    %c1_i32 = arith.constant 1 : i32
    %2 = arith.select %1, %c1_i32, %c16_i32 : i32
    %3 = vector.broadcast %2 : i32 to vector<32x1xi32>
    %4 = arith.remsi %0, %3 : vector<32x1xi32>
    %c0_i32_0 = arith.constant 0 : i32
    %5 = vector.broadcast %c0_i32_0 : i32 to vector<32x1xi32>
    %6 = arith.cmpi ne, %4, %5 : vector<32x1xi32>
    %c0_i32_1 = arith.constant 0 : i32
    %7 = vector.broadcast %c0_i32_1 : i32 to vector<32x1xi32>
    %8 = arith.cmpi slt, %4, %7 : vector<32x1xi32>
    %c0_i32_2 = arith.constant 0 : i32
    %9 = arith.cmpi slt, %2, %c0_i32_2 : i32
    %10 = vector.broadcast %9 : i1 to vector<32x1xi1>
    %11 = vector.broadcast %10 : vector<32x1xi1> to vector<32x1xi1>
    %12 = arith.xori %8, %11 : vector<32x1xi1>
    %13 = arith.andi %12, %6 : vector<32x1xi1>
    %14 = vector.broadcast %2 : i32 to vector<32x1xi32>
    %15 = arith.addi %4, %14 : vector<32x1xi32>
    %16 = arith.select %13, %15, %4 : vector<32x1xi1>, vector<32x1xi32>
    %c0_i32_3 = arith.constant 0 : i32
    %17 = vector.broadcast %c0_i32_3 : i32 to vector<32x1xi32>
    %18 = arith.cmpi eq, %16, %17 : vector<32x1xi32>
    %c15_i32 = arith.constant 15 : i32
    %19 = vector.broadcast %c15_i32 : i32 to vector<32x1xi32>
    %20 = arith.cmpi eq, %16, %19 : vector<32x1xi32>
    %c0 = arith.constant 0 : index
    %c0_4 = arith.constant 0 : index
    %21 = vector.load %arg0[%c0, %c0_4] : memref<64x4xf32, #tpu.memory_space<vmem>>, vector<64x4xf32>
    %c0_5 = arith.constant 0 : index
    %c0_6 = arith.constant 0 : index
    %22 = vector.load %arg1[%c0_5, %c0_6] : memref<4x16xf32, #tpu.memory_space<vmem>>, vector<4x16xf32>
    %cst = arith.constant dense<0.000000e+00> : vector<64x16xf32>
    %23 = tpu.matmul %21, %22, %cst {dimension_numbers = #tpu.dot_dimension_numbers<[1], [0], [0], [1], [0, 0, 1, 1], [], []>} : vector<64x4xf32>, vector<4x16xf32>, vector<64x16xf32> -> vector<64x16xf32>
    %c0_7 = arith.constant 0 : index
    %c0_8 = arith.constant 0 : index
    %24 = vector.load %arg2[%c0_7, %c0_8] : memref<1x16xf32, #tpu.memory_space<vmem>>, vector<1x16xf32>
    %25 = vector.broadcast %24 : vector<1x16xf32> to vector<64x16xf32>
    %26 = arith.addf %23, %25 : vector<64x16xf32>
    %cst_9 = arith.constant 0.000000e+00 : f32
    %27 = vector.broadcast %cst_9 : f32 to vector<64x16xf32>
    %28 = arith.maximumf %26, %27 : vector<64x16xf32>
    %29 = vector.extract_strided_slice %28 {offsets = [0, 0], sizes = [32, 16], strides = [1, 1]} : vector<64x16xf32> to vector<32x16xf32>
    %30 = vector.extract_strided_slice %28 {offsets = [32, 0], sizes = [32, 16], strides = [1, 1]} : vector<64x16xf32> to vector<32x16xf32>
    %cst_10 = arith.constant 0.000000e+00 : f32
    %31 = vector.broadcast %cst_10 : f32 to vector<1x16xf32>
    %32 = vector.extract_strided_slice %30 {offsets = [0, 0], sizes = [31, 16], strides = [1, 1]} : vector<32x16xf32> to vector<31x16xf32>
    %33 = tpu.concatenate %31, %32 in 0 : vector<1x16xf32>, vector<31x16xf32> -> vector<32x16xf32>
    %cst_11 = arith.constant 0.000000e+00 : f32
    %34 = vector.shape_cast %18 : vector<32x1xi1> to vector<32x1xi1>
    %35 = vector.broadcast %34 : vector<32x1xi1> to vector<32x16xi1>
    %36 = vector.broadcast %cst_11 : f32 to vector<32x16xf32>
    %37 = arith.select %35, %36, %33 : vector<32x16xi1>, vector<32x16xf32>
    %38 = vector.extract_strided_slice %29 {offsets = [1, 0], sizes = [31, 16], strides = [1, 1]} : vector<32x16xf32> to vector<31x16xf32>
    %cst_12 = arith.constant 0.000000e+00 : f32
    %39 = vector.broadcast %cst_12 : f32 to vector<1x16xf32>
    %40 = tpu.concatenate %38, %39 in 0 : vector<31x16xf32>, vector<1x16xf32> -> vector<32x16xf32>
    %cst_13 = arith.constant 0.000000e+00 : f32
    %41 = vector.shape_cast %20 : vector<32x1xi1> to vector<32x1xi1>
    %42 = vector.broadcast %41 : vector<32x1xi1> to vector<32x16xi1>
    %43 = vector.broadcast %cst_13 : f32 to vector<32x16xf32>
    %44 = arith.select %42, %43, %40 : vector<32x16xi1>, vector<32x16xf32>
    %45 = tpu.concatenate %37, %29, %30, %44 in 1 : vector<32x16xf32>, vector<32x16xf32>, vector<32x16xf32>, vector<32x16xf32> -> vector<32x64xf32>
    %c0_14 = arith.constant 0 : index
    %c0_15 = arith.constant 0 : index
    %46 = vector.load %arg3[%c0_14, %c0_15] : memref<64x32xf32, #tpu.memory_space<vmem>>, vector<64x32xf32>
    %cst_16 = arith.constant dense<0.000000e+00> : vector<32x32xf32>
    %47 = tpu.matmul %45, %46, %cst_16 {dimension_numbers = #tpu.dot_dimension_numbers<[1], [0], [0], [1], [0, 0, 1, 1], [], []>} : vector<32x64xf32>, vector<64x32xf32>, vector<32x32xf32> -> vector<32x32xf32>
    %c0_17 = arith.constant 0 : index
    %c0_18 = arith.constant 0 : index
    %48 = vector.load %arg4[%c0_17, %c0_18] : memref<1x32xf32, #tpu.memory_space<vmem>>, vector<1x32xf32>
    %49 = vector.broadcast %48 : vector<1x32xf32> to vector<32x32xf32>
    %50 = arith.addf %47, %49 : vector<32x32xf32>
    %cst_19 = arith.constant 0.000000e+00 : f32
    %51 = vector.broadcast %cst_19 : f32 to vector<32x32xf32>
    %52 = arith.maximumf %50, %51 : vector<32x32xf32>
    %c0_20 = arith.constant 0 : index
    %c0_21 = arith.constant 0 : index
    %53 = vector.load %arg5[%c0_20, %c0_21] : memref<96x32xf32, #tpu.memory_space<vmem>>, vector<96x32xf32>
    %c0_22 = arith.constant 0 : index
    %c0_23 = arith.constant 0 : index
    %54 = vector.load %arg6[%c0_22, %c0_23] : memref<1x32xf32, #tpu.memory_space<vmem>>, vector<1x32xf32>
    %cst_24 = arith.constant 0.000000e+00 : f32
    %55 = vector.broadcast %cst_24 : f32 to vector<1x32xf32>
    %56 = vector.extract_strided_slice %52 {offsets = [0, 0], sizes = [31, 32], strides = [1, 1]} : vector<32x32xf32> to vector<31x32xf32>
    %57 = tpu.concatenate %55, %56 in 0 : vector<1x32xf32>, vector<31x32xf32> -> vector<32x32xf32>
    %cst_25 = arith.constant 0.000000e+00 : f32
    %58 = vector.shape_cast %18 : vector<32x1xi1> to vector<32x1xi1>
    %59 = vector.broadcast %58 : vector<32x1xi1> to vector<32x32xi1>
    %60 = vector.broadcast %cst_25 : f32 to vector<32x32xf32>
    %61 = arith.select %59, %60, %57 : vector<32x32xi1>, vector<32x32xf32>
    %62 = vector.extract_strided_slice %52 {offsets = [1, 0], sizes = [31, 32], strides = [1, 1]} : vector<32x32xf32> to vector<31x32xf32>
    %cst_26 = arith.constant 0.000000e+00 : f32
    %63 = vector.broadcast %cst_26 : f32 to vector<1x32xf32>
    %64 = tpu.concatenate %62, %63 in 0 : vector<31x32xf32>, vector<1x32xf32> -> vector<32x32xf32>
    %cst_27 = arith.constant 0.000000e+00 : f32
    %65 = vector.shape_cast %20 : vector<32x1xi1> to vector<32x1xi1>
    %66 = vector.broadcast %65 : vector<32x1xi1> to vector<32x32xi1>
    %67 = vector.broadcast %cst_27 : f32 to vector<32x32xf32>
    %68 = arith.select %66, %67, %64 : vector<32x32xi1>, vector<32x32xf32>
    %69 = tpu.concatenate %61, %52, %68 in 1 : vector<32x32xf32>, vector<32x32xf32>, vector<32x32xf32> -> vector<32x96xf32>
    %cst_28 = arith.constant dense<0.000000e+00> : vector<32x32xf32>
    %70 = tpu.matmul %69, %53, %cst_28 {dimension_numbers = #tpu.dot_dimension_numbers<[1], [0], [0], [1], [0, 0, 1, 1], [], []>} : vector<32x96xf32>, vector<96x32xf32>, vector<32x32xf32> -> vector<32x32xf32>
    %71 = vector.broadcast %54 : vector<1x32xf32> to vector<32x32xf32>
    %72 = arith.addf %70, %71 : vector<32x32xf32>
    %cst_29 = arith.constant 0.000000e+00 : f32
    %73 = vector.broadcast %cst_29 : f32 to vector<32x32xf32>
    %74 = arith.maximumf %72, %73 : vector<32x32xf32>
    %c0_30 = arith.constant 0 : index
    %c0_31 = arith.constant 0 : index
    %c0_32 = arith.constant 0 : index
    %75 = vector.load %arg7[%c0_30, %c0_31, %c0_32] : memref<2x96x16xf32, #tpu.memory_space<vmem>>, vector<1x96x16xf32>
    %76 = vector.shape_cast %75 : vector<1x96x16xf32> to vector<96x16xf32>
    %cst_33 = arith.constant 0.000000e+00 : f32
    %77 = vector.broadcast %cst_33 : f32 to vector<1x32xf32>
    %78 = vector.extract_strided_slice %74 {offsets = [0, 0], sizes = [31, 32], strides = [1, 1]} : vector<32x32xf32> to vector<31x32xf32>
    %79 = tpu.concatenate %77, %78 in 0 : vector<1x32xf32>, vector<31x32xf32> -> vector<32x32xf32>
    %cst_34 = arith.constant 0.000000e+00 : f32
    %80 = vector.shape_cast %18 : vector<32x1xi1> to vector<32x1xi1>
    %81 = vector.broadcast %80 : vector<32x1xi1> to vector<32x32xi1>
    %82 = vector.broadcast %cst_34 : f32 to vector<32x32xf32>
    %83 = arith.select %81, %82, %79 : vector<32x32xi1>, vector<32x32xf32>
    %84 = vector.extract_strided_slice %74 {offsets = [1, 0], sizes = [31, 32], strides = [1, 1]} : vector<32x32xf32> to vector<31x32xf32>
    %cst_35 = arith.constant 0.000000e+00 : f32
    %85 = vector.broadcast %cst_35 : f32 to vector<1x32xf32>
    %86 = tpu.concatenate %84, %85 in 0 : vector<31x32xf32>, vector<1x32xf32> -> vector<32x32xf32>
    %cst_36 = arith.constant 0.000000e+00 : f32
    %87 = vector.shape_cast %20 : vector<32x1xi1> to vector<32x1xi1>
    %88 = vector.broadcast %87 : vector<32x1xi1> to vector<32x32xi1>
    %89 = vector.broadcast %cst_36 : f32 to vector<32x32xf32>
    %90 = arith.select %88, %89, %86 : vector<32x32xi1>, vector<32x32xf32>
    %91 = tpu.concatenate %83, %74, %90 in 1 : vector<32x32xf32>, vector<32x32xf32>, vector<32x32xf32> -> vector<32x96xf32>
    %cst_37 = arith.constant dense<0.000000e+00> : vector<32x16xf32>
    %92 = tpu.matmul %91, %76, %cst_37 {dimension_numbers = #tpu.dot_dimension_numbers<[1], [0], [0], [1], [0, 0, 1, 1], [], []>} : vector<32x96xf32>, vector<96x16xf32>, vector<32x16xf32> -> vector<32x16xf32>
    %cst_38 = arith.constant 0.000000e+00 : f32
    %93 = vector.broadcast %cst_38 : f32 to vector<32x16xf32>
    %94 = arith.maximumf %92, %93 : vector<32x16xf32>
    %c0_39 = arith.constant 0 : index
    %c0_40 = arith.constant 0 : index
    %c0_41 = arith.constant 0 : index
    %95 = vector.load %arg8[%c0_39, %c0_40, %c0_41] : memref<2x16x32xf32, #tpu.memory_space<vmem>>, vector<1x16x32xf32>
    %96 = vector.shape_cast %95 : vector<1x16x32xf32> to vector<16x32xf32>
    %cst_42 = arith.constant dense<0.000000e+00> : vector<32x32xf32>
    %97 = tpu.matmul %94, %96, %cst_42 {dimension_numbers = #tpu.dot_dimension_numbers<[1], [0], [0], [1], [0, 0, 1, 1], [], []>} : vector<32x16xf32>, vector<16x32xf32>, vector<32x32xf32> -> vector<32x32xf32>
    %98 = arith.addf %72, %97 : vector<32x32xf32>
    %cst_43 = arith.constant 0.000000e+00 : f32
    %99 = vector.broadcast %cst_43 : f32 to vector<32x32xf32>
    %100 = arith.maximumf %98, %99 : vector<32x32xf32>
    %c1 = arith.constant 1 : index
    %c0_44 = arith.constant 0 : index
    %c0_45 = arith.constant 0 : index
    %101 = vector.load %arg7[%c1, %c0_44, %c0_45] : memref<2x96x16xf32, #tpu.memory_space<vmem>>, vector<1x96x16xf32>
    %102 = vector.shape_cast %101 : vector<1x96x16xf32> to vector<96x16xf32>
    %cst_46 = arith.constant 0.000000e+00 : f32
    %103 = vector.broadcast %cst_46 : f32 to vector<1x32xf32>
    %104 = vector.extract_strided_slice %100 {offsets = [0, 0], sizes = [31, 32], strides = [1, 1]} : vector<32x32xf32> to vector<31x32xf32>
    %105 = tpu.concatenate %103, %104 in 0 : vector<1x32xf32>, vector<31x32xf32> -> vector<32x32xf32>
    %cst_47 = arith.constant 0.000000e+00 : f32
    %106 = vector.shape_cast %18 : vector<32x1xi1> to vector<32x1xi1>
    %107 = vector.broadcast %106 : vector<32x1xi1> to vector<32x32xi1>
    %108 = vector.broadcast %cst_47 : f32 to vector<32x32xf32>
    %109 = arith.select %107, %108, %105 : vector<32x32xi1>, vector<32x32xf32>
    %110 = vector.extract_strided_slice %100 {offsets = [1, 0], sizes = [31, 32], strides = [1, 1]} : vector<32x32xf32> to vector<31x32xf32>
    %cst_48 = arith.constant 0.000000e+00 : f32
    %111 = vector.broadcast %cst_48 : f32 to vector<1x32xf32>
    %112 = tpu.concatenate %110, %111 in 0 : vector<31x32xf32>, vector<1x32xf32> -> vector<32x32xf32>
    %cst_49 = arith.constant 0.000000e+00 : f32
    %113 = vector.shape_cast %20 : vector<32x1xi1> to vector<32x1xi1>
    %114 = vector.broadcast %113 : vector<32x1xi1> to vector<32x32xi1>
    %115 = vector.broadcast %cst_49 : f32 to vector<32x32xf32>
    %116 = arith.select %114, %115, %112 : vector<32x32xi1>, vector<32x32xf32>
    %117 = tpu.concatenate %109, %100, %116 in 1 : vector<32x32xf32>, vector<32x32xf32>, vector<32x32xf32> -> vector<32x96xf32>
    %cst_50 = arith.constant dense<0.000000e+00> : vector<32x16xf32>
    %118 = tpu.matmul %117, %102, %cst_50 {dimension_numbers = #tpu.dot_dimension_numbers<[1], [0], [0], [1], [0, 0, 1, 1], [], []>} : vector<32x96xf32>, vector<96x16xf32>, vector<32x16xf32> -> vector<32x16xf32>
    %cst_51 = arith.constant 0.000000e+00 : f32
    %119 = vector.broadcast %cst_51 : f32 to vector<32x16xf32>
    %120 = arith.maximumf %118, %119 : vector<32x16xf32>
    %c1_52 = arith.constant 1 : index
    %c0_53 = arith.constant 0 : index
    %c0_54 = arith.constant 0 : index
    %121 = vector.load %arg8[%c1_52, %c0_53, %c0_54] : memref<2x16x32xf32, #tpu.memory_space<vmem>>, vector<1x16x32xf32>
    %122 = vector.shape_cast %121 : vector<1x16x32xf32> to vector<16x32xf32>
    %cst_55 = arith.constant dense<0.000000e+00> : vector<32x32xf32>
    %123 = tpu.matmul %120, %122, %cst_55 {dimension_numbers = #tpu.dot_dimension_numbers<[1], [0], [0], [1], [0, 0, 1, 1], [], []>} : vector<32x16xf32>, vector<16x32xf32>, vector<32x32xf32> -> vector<32x32xf32>
    %124 = arith.addf %98, %123 : vector<32x32xf32>
    %cst_56 = arith.constant 0.000000e+00 : f32
    %125 = vector.broadcast %cst_56 : f32 to vector<32x32xf32>
    %126 = arith.maximumf %124, %125 : vector<32x32xf32>
    %c0_57 = arith.constant 0 : index
    %c0_58 = arith.constant 0 : index
    %127 = vector.load %arg9[%c0_57, %c0_58] : memref<32x16xf32, #tpu.memory_space<vmem>>, vector<32x16xf32>
    %cst_59 = arith.constant dense<0.000000e+00> : vector<32x16xf32>
    %128 = tpu.matmul %126, %127, %cst_59 {dimension_numbers = #tpu.dot_dimension_numbers<[1], [0], [0], [1], [0, 0, 1, 1], [], []>} : vector<32x32xf32>, vector<32x16xf32>, vector<32x16xf32> -> vector<32x16xf32>
    %c0_60 = arith.constant 0 : index
    %c0_61 = arith.constant 0 : index
    %129 = vector.load %arg10[%c0_60, %c0_61] : memref<1x16xf32, #tpu.memory_space<vmem>>, vector<1x16xf32>
    %130 = vector.broadcast %129 : vector<1x16xf32> to vector<32x16xf32>
    %131 = arith.addf %128, %130 : vector<32x16xf32>
    %c0_62 = arith.constant 0 : index
    %c0_63 = arith.constant 0 : index
    %132 = vector.load %arg11[%c0_62, %c0_63] : memref<16x64xf32, #tpu.memory_space<vmem>>, vector<16x64xf32>
    %c0_64 = arith.constant 0 : index
    %c0_65 = arith.constant 0 : index
    %133 = vector.load %arg12[%c0_64, %c0_65] : memref<64x16xf32, #tpu.memory_space<vmem>>, vector<64x16xf32>
    %134 = arith.mulf %131, %131 : vector<32x16xf32>
    %cst_66 = arith.constant dense<0.000000e+00> : vector<32xf32>
    %135 = vector.multi_reduction <add>, %134, %cst_66 [1] : vector<32x16xf32> to vector<32xf32>
    %136 = vector.shape_cast %135 : vector<32xf32> to vector<32x1xf32>
    %137 = arith.mulf %132, %132 : vector<16x64xf32>
    %cst_67 = arith.constant dense<0.000000e+00> : vector<64xf32>
    %138 = vector.multi_reduction <add>, %137, %cst_67 [0] : vector<16x64xf32> to vector<64xf32>
    %139 = vector.shape_cast %138 : vector<64xf32> to vector<1x64xf32>
    %140 = vector.broadcast %136 : vector<32x1xf32> to vector<32x64xf32>
    %141 = vector.broadcast %139 : vector<1x64xf32> to vector<32x64xf32>
    %142 = arith.addf %140, %141 : vector<32x64xf32>
    %cst_68 = arith.constant dense<0.000000e+00> : vector<32x64xf32>
    %143 = tpu.matmul %131, %132, %cst_68 {dimension_numbers = #tpu.dot_dimension_numbers<[1], [0], [0], [1], [0, 0, 1, 1], [], []>} : vector<32x16xf32>, vector<16x64xf32>, vector<32x64xf32> -> vector<32x64xf32>
    %cst_69 = arith.constant 2.000000e+00 : f32
    %144 = vector.broadcast %cst_69 : f32 to vector<32x64xf32>
    %145 = arith.mulf %144, %143 : vector<32x64xf32>
    %146 = arith.subf %142, %145 : vector<32x64xf32>
    %cst_70 = arith.constant dense<0x7F800000> : vector<32xf32>
    %147 = vector.multi_reduction <minimumf>, %146, %cst_70 [1] : vector<32x64xf32> to vector<32xf32>
    %148 = vector.shape_cast %147 : vector<32xf32> to vector<32x1xf32>
    %149 = tpu.iota {dimensions = array<i32: 1>} : vector<32x64xi32>
    %150 = vector.broadcast %148 : vector<32x1xf32> to vector<32x64xf32>
    %151 = arith.cmpf ole, %146, %150 : vector<32x64xf32>
    %c64_i32 = arith.constant 64 : i32
    %152 = vector.broadcast %c64_i32 : i32 to vector<32x64xi32>
    %153 = arith.select %151, %149, %152 : vector<32x64xi1>, vector<32x64xi32>
    %cst_71 = arith.constant dense<2147483647> : vector<32xi32>
    %154 = vector.multi_reduction <minsi>, %153, %cst_71 [1] : vector<32x64xi32> to vector<32xi32>
    %155 = vector.shape_cast %154 : vector<32xi32> to vector<32x1xi32>
    %156 = vector.broadcast %155 : vector<32x1xi32> to vector<32x64xi32>
    %157 = arith.cmpi eq, %149, %156 : vector<32x64xi32>
    %158 = arith.extui %157 : vector<32x64xi1> to vector<32x64xi32>
    %159 = arith.sitofp %158 : vector<32x64xi32> to vector<32x64xf32>
    %cst_72 = arith.constant dense<0.000000e+00> : vector<32x16xf32>
    %160 = tpu.matmul %159, %133, %cst_72 {dimension_numbers = #tpu.dot_dimension_numbers<[1], [0], [0], [1], [0, 0, 1, 1], [], []>} : vector<32x64xf32>, vector<64x16xf32>, vector<32x16xf32> -> vector<32x16xf32>
    %c0_73 = arith.constant 0 : index
    %c0_74 = arith.constant 0 : index
    %161 = vector.load %arg24[%c0_73, %c0_74] : memref<32x1xi32, #tpu.memory_space<vmem>>, vector<32x1xi32>
    tpu.vector_store %arg24[%c0_73, %c0_74], %155 {strides = array<i32>} : memref<32x1xi32, #tpu.memory_space<vmem>>, vector<32x1xi32>,
    %c0_75 = arith.constant 0 : index
    %c0_76 = arith.constant 0 : index
    %162 = vector.load %arg25[%c0_75, %c0_76] : memref<32x64xf32, #tpu.memory_space<vmem>>, vector<32x64xf32>
    tpu.vector_store %arg25[%c0_75, %c0_76], %159 {strides = array<i32>} : memref<32x64xf32, #tpu.memory_space<vmem>>, vector<32x64xf32>,
    %163 = arith.subf %160, %131 : vector<32x16xf32>
    %164 = arith.mulf %163, %163 : vector<32x16xf32>
    %165 = vector.shape_cast %164 : vector<32x16xf32> to vector<1x32x16xf32>
    %cst_77 = arith.constant dense<0.000000e+00> : vector<1xf32>
    %166 = vector.multi_reduction <add>, %165, %cst_77 [1, 2] : vector<1x32x16xf32> to vector<1xf32>
    %167 = vector.shape_cast %166 : vector<1xf32> to vector<1x1x1xf32>
    %168 = vector.extract %167[0, 0, 0] : f32 from vector<1x1x1xf32>
    %cst_78 = arith.constant 5.120000e+02 : f32
    %169 = arith.divf %168, %cst_78 : f32
    %cst_79 = arith.constant 1.250000e+00 : f32
    %170 = arith.mulf %cst_79, %169 : f32
    %171 = vector.broadcast %170 : f32 to vector<1x1xf32>
    %c0_80 = arith.constant 0 : index
    %c0_81 = arith.constant 0 : index
    %172 = vector.load %arg22[%c0_80, %c0_81] : memref<1x1xf32, #tpu.memory_space<vmem>>, vector<1x1xf32>
    tpu.vector_store %arg22[%c0_80, %c0_81], %171 {strides = array<i32>} : memref<1x1xf32, #tpu.memory_space<vmem>>, vector<1x1xf32>,
    %cst_82 = arith.constant dense<0.000000e+00> : vector<64xf32>
    %173 = vector.multi_reduction <add>, %159, %cst_82 [0] : vector<32x64xf32> to vector<64xf32>
    %174 = vector.shape_cast %173 : vector<64xf32> to vector<1x64xf32>
    %cst_83 = arith.constant 3.200000e+01 : f32
    %175 = vector.broadcast %cst_83 : f32 to vector<1x64xf32>
    %176 = arith.divf %174, %175 : vector<1x64xf32>
    %cst_84 = arith.constant 1.000000e-10 : f32
    %177 = vector.broadcast %cst_84 : f32 to vector<1x64xf32>
    %178 = arith.addf %176, %177 : vector<1x64xf32>
    %179 = math.log %178 : vector<1x64xf32>
    %180 = arith.mulf %176, %179 : vector<1x64xf32>
    %181 = vector.shape_cast %180 : vector<1x64xf32> to vector<1x1x64xf32>
    %cst_85 = arith.constant dense<0.000000e+00> : vector<1xf32>
    %182 = vector.multi_reduction <add>, %181, %cst_85 [1, 2] : vector<1x1x64xf32> to vector<1xf32>
    %183 = vector.shape_cast %182 : vector<1xf32> to vector<1x1x1xf32>
    %184 = vector.extract %183[0, 0, 0] : f32 from vector<1x1x1xf32>
    %cst_86 = arith.constant 0.000000e+00 : f32
    %185 = arith.subf %cst_86, %184 : f32
    %186 = math.exp %185 : f32
    %187 = vector.broadcast %186 : f32 to vector<1x1xf32>
    %c0_87 = arith.constant 0 : index
    %c0_88 = arith.constant 0 : index
    %188 = vector.load %arg23[%c0_87, %c0_88] : memref<1x1xf32, #tpu.memory_space<vmem>>, vector<1x1xf32>
    tpu.vector_store %arg23[%c0_87, %c0_88], %187 {strides = array<i32>} : memref<1x1xf32, #tpu.memory_space<vmem>>, vector<1x1xf32>,
    %c0_89 = arith.constant 0 : index
    %c0_90 = arith.constant 0 : index
    %189 = vector.load %arg13[%c0_89, %c0_90] : memref<48x32xf32, #tpu.memory_space<vmem>>, vector<48x32xf32>
    %c0_91 = arith.constant 0 : index
    %c0_92 = arith.constant 0 : index
    %190 = vector.load %arg14[%c0_91, %c0_92] : memref<1x32xf32, #tpu.memory_space<vmem>>, vector<1x32xf32>
    %cst_93 = arith.constant 0.000000e+00 : f32
    %191 = vector.broadcast %cst_93 : f32 to vector<1x16xf32>
    %192 = vector.extract_strided_slice %160 {offsets = [0, 0], sizes = [31, 16], strides = [1, 1]} : vector<32x16xf32> to vector<31x16xf32>
    %193 = tpu.concatenate %191, %192 in 0 : vector<1x16xf32>, vector<31x16xf32> -> vector<32x16xf32>
    %cst_94 = arith.constant 0.000000e+00 : f32
    %194 = vector.shape_cast %18 : vector<32x1xi1> to vector<32x1xi1>
    %195 = vector.broadcast %194 : vector<32x1xi1> to vector<32x16xi1>
    %196 = vector.broadcast %cst_94 : f32 to vector<32x16xf32>
    %197 = arith.select %195, %196, %193 : vector<32x16xi1>, vector<32x16xf32>
    %198 = vector.extract_strided_slice %160 {offsets = [1, 0], sizes = [31, 16], strides = [1, 1]} : vector<32x16xf32> to vector<31x16xf32>
    %cst_95 = arith.constant 0.000000e+00 : f32
    %199 = vector.broadcast %cst_95 : f32 to vector<1x16xf32>
    %200 = tpu.concatenate %198, %199 in 0 : vector<31x16xf32>, vector<1x16xf32> -> vector<32x16xf32>
    %cst_96 = arith.constant 0.000000e+00 : f32
    %201 = vector.shape_cast %20 : vector<32x1xi1> to vector<32x1xi1>
    %202 = vector.broadcast %201 : vector<32x1xi1> to vector<32x16xi1>
    %203 = vector.broadcast %cst_96 : f32 to vector<32x16xf32>
    %204 = arith.select %202, %203, %200 : vector<32x16xi1>, vector<32x16xf32>
    %205 = tpu.concatenate %197, %160, %204 in 1 : vector<32x16xf32>, vector<32x16xf32>, vector<32x16xf32> -> vector<32x48xf32>
    %cst_97 = arith.constant dense<0.000000e+00> : vector<32x32xf32>
    %206 = tpu.matmul %205, %189, %cst_97 {dimension_numbers = #tpu.dot_dimension_numbers<[1], [0], [0], [1], [0, 0, 1, 1], [], []>} : vector<32x48xf32>, vector<48x32xf32>, vector<32x32xf32> -> vector<32x32xf32>
    %207 = vector.broadcast %190 : vector<1x32xf32> to vector<32x32xf32>
    %208 = arith.addf %206, %207 : vector<32x32xf32>
    %cst_98 = arith.constant 0.000000e+00 : f32
    %209 = vector.broadcast %cst_98 : f32 to vector<32x32xf32>
    %210 = arith.maximumf %208, %209 : vector<32x32xf32>
    %c0_99 = arith.constant 0 : index
    %c0_100 = arith.constant 0 : index
    %c0_101 = arith.constant 0 : index
    %211 = vector.load %arg15[%c0_99, %c0_100, %c0_101] : memref<2x96x16xf32, #tpu.memory_space<vmem>>, vector<1x96x16xf32>
    %212 = vector.shape_cast %211 : vector<1x96x16xf32> to vector<96x16xf32>
    %cst_102 = arith.constant 0.000000e+00 : f32
    %213 = vector.broadcast %cst_102 : f32 to vector<1x32xf32>
    %214 = vector.extract_strided_slice %210 {offsets = [0, 0], sizes = [31, 32], strides = [1, 1]} : vector<32x32xf32> to vector<31x32xf32>
    %215 = tpu.concatenate %213, %214 in 0 : vector<1x32xf32>, vector<31x32xf32> -> vector<32x32xf32>
    %cst_103 = arith.constant 0.000000e+00 : f32
    %216 = vector.shape_cast %18 : vector<32x1xi1> to vector<32x1xi1>
    %217 = vector.broadcast %216 : vector<32x1xi1> to vector<32x32xi1>
    %218 = vector.broadcast %cst_103 : f32 to vector<32x32xf32>
    %219 = arith.select %217, %218, %215 : vector<32x32xi1>, vector<32x32xf32>
    %220 = vector.extract_strided_slice %210 {offsets = [1, 0], sizes = [31, 32], strides = [1, 1]} : vector<32x32xf32> to vector<31x32xf32>
    %cst_104 = arith.constant 0.000000e+00 : f32
    %221 = vector.broadcast %cst_104 : f32 to vector<1x32xf32>
    %222 = tpu.concatenate %220, %221 in 0 : vector<31x32xf32>, vector<1x32xf32> -> vector<32x32xf32>
    %cst_105 = arith.constant 0.000000e+00 : f32
    %223 = vector.shape_cast %20 : vector<32x1xi1> to vector<32x1xi1>
    %224 = vector.broadcast %223 : vector<32x1xi1> to vector<32x32xi1>
    %225 = vector.broadcast %cst_105 : f32 to vector<32x32xf32>
    %226 = arith.select %224, %225, %222 : vector<32x32xi1>, vector<32x32xf32>
    %227 = tpu.concatenate %219, %210, %226 in 1 : vector<32x32xf32>, vector<32x32xf32>, vector<32x32xf32> -> vector<32x96xf32>
    %cst_106 = arith.constant dense<0.000000e+00> : vector<32x16xf32>
    %228 = tpu.matmul %227, %212, %cst_106 {dimension_numbers = #tpu.dot_dimension_numbers<[1], [0], [0], [1], [0, 0, 1, 1], [], []>} : vector<32x96xf32>, vector<96x16xf32>, vector<32x16xf32> -> vector<32x16xf32>
    %cst_107 = arith.constant 0.000000e+00 : f32
    %229 = vector.broadcast %cst_107 : f32 to vector<32x16xf32>
    %230 = arith.maximumf %228, %229 : vector<32x16xf32>
    %c0_108 = arith.constant 0 : index
    %c0_109 = arith.constant 0 : index
    %c0_110 = arith.constant 0 : index
    %231 = vector.load %arg16[%c0_108, %c0_109, %c0_110] : memref<2x16x32xf32, #tpu.memory_space<vmem>>, vector<1x16x32xf32>
    %232 = vector.shape_cast %231 : vector<1x16x32xf32> to vector<16x32xf32>
    %cst_111 = arith.constant dense<0.000000e+00> : vector<32x32xf32>
    %233 = tpu.matmul %230, %232, %cst_111 {dimension_numbers = #tpu.dot_dimension_numbers<[1], [0], [0], [1], [0, 0, 1, 1], [], []>} : vector<32x16xf32>, vector<16x32xf32>, vector<32x32xf32> -> vector<32x32xf32>
    %234 = arith.addf %208, %233 : vector<32x32xf32>
    %cst_112 = arith.constant 0.000000e+00 : f32
    %235 = vector.broadcast %cst_112 : f32 to vector<32x32xf32>
    %236 = arith.maximumf %234, %235 : vector<32x32xf32>
    %c1_113 = arith.constant 1 : index
    %c0_114 = arith.constant 0 : index
    %c0_115 = arith.constant 0 : index
    %237 = vector.load %arg15[%c1_113, %c0_114, %c0_115] : memref<2x96x16xf32, #tpu.memory_space<vmem>>, vector<1x96x16xf32>
    %238 = vector.shape_cast %237 : vector<1x96x16xf32> to vector<96x16xf32>
    %cst_116 = arith.constant 0.000000e+00 : f32
    %239 = vector.broadcast %cst_116 : f32 to vector<1x32xf32>
    %240 = vector.extract_strided_slice %236 {offsets = [0, 0], sizes = [31, 32], strides = [1, 1]} : vector<32x32xf32> to vector<31x32xf32>
    %241 = tpu.concatenate %239, %240 in 0 : vector<1x32xf32>, vector<31x32xf32> -> vector<32x32xf32>
    %cst_117 = arith.constant 0.000000e+00 : f32
    %242 = vector.shape_cast %18 : vector<32x1xi1> to vector<32x1xi1>
    %243 = vector.broadcast %242 : vector<32x1xi1> to vector<32x32xi1>
    %244 = vector.broadcast %cst_117 : f32 to vector<32x32xf32>
    %245 = arith.select %243, %244, %241 : vector<32x32xi1>, vector<32x32xf32>
    %246 = vector.extract_strided_slice %236 {offsets = [1, 0], sizes = [31, 32], strides = [1, 1]} : vector<32x32xf32> to vector<31x32xf32>
    %cst_118 = arith.constant 0.000000e+00 : f32
    %247 = vector.broadcast %cst_118 : f32 to vector<1x32xf32>
    %248 = tpu.concatenate %246, %247 in 0 : vector<31x32xf32>, vector<1x32xf32> -> vector<32x32xf32>
    %cst_119 = arith.constant 0.000000e+00 : f32
    %249 = vector.shape_cast %20 : vector<32x1xi1> to vector<32x1xi1>
    %250 = vector.broadcast %249 : vector<32x1xi1> to vector<32x32xi1>
    %251 = vector.broadcast %cst_119 : f32 to vector<32x32xf32>
    %252 = arith.select %250, %251, %248 : vector<32x32xi1>, vector<32x32xf32>
    %253 = tpu.concatenate %245, %236, %252 in 1 : vector<32x32xf32>, vector<32x32xf32>, vector<32x32xf32> -> vector<32x96xf32>
    %cst_120 = arith.constant dense<0.000000e+00> : vector<32x16xf32>
    %254 = tpu.matmul %253, %238, %cst_120 {dimension_numbers = #tpu.dot_dimension_numbers<[1], [0], [0], [1], [0, 0, 1, 1], [], []>} : vector<32x96xf32>, vector<96x16xf32>, vector<32x16xf32> -> vector<32x16xf32>
    %cst_121 = arith.constant 0.000000e+00 : f32
    %255 = vector.broadcast %cst_121 : f32 to vector<32x16xf32>
    %256 = arith.maximumf %254, %255 : vector<32x16xf32>
    %c1_122 = arith.constant 1 : index
    %c0_123 = arith.constant 0 : index
    %c0_124 = arith.constant 0 : index
    %257 = vector.load %arg16[%c1_122, %c0_123, %c0_124] : memref<2x16x32xf32, #tpu.memory_space<vmem>>, vector<1x16x32xf32>
    %258 = vector.shape_cast %257 : vector<1x16x32xf32> to vector<16x32xf32>
    %cst_125 = arith.constant dense<0.000000e+00> : vector<32x32xf32>
    %259 = tpu.matmul %256, %258, %cst_125 {dimension_numbers = #tpu.dot_dimension_numbers<[1], [0], [0], [1], [0, 0, 1, 1], [], []>} : vector<32x16xf32>, vector<16x32xf32>, vector<32x32xf32> -> vector<32x32xf32>
    %260 = arith.addf %234, %259 : vector<32x32xf32>
    %cst_126 = arith.constant 0.000000e+00 : f32
    %261 = vector.broadcast %cst_126 : f32 to vector<32x32xf32>
    %262 = arith.maximumf %260, %261 : vector<32x32xf32>
    %cst_127 = arith.constant 0.000000e+00 : f32
    %263 = vector.broadcast %cst_127 : f32 to vector<1x32xf32>
    %264 = vector.extract_strided_slice %262 {offsets = [0, 0], sizes = [31, 32], strides = [1, 1]} : vector<32x32xf32> to vector<31x32xf32>
    %265 = tpu.concatenate %263, %264 in 0 : vector<1x32xf32>, vector<31x32xf32> -> vector<32x32xf32>
    %cst_128 = arith.constant 0.000000e+00 : f32
    %266 = vector.shape_cast %18 : vector<32x1xi1> to vector<32x1xi1>
    %267 = vector.broadcast %266 : vector<32x1xi1> to vector<32x32xi1>
    %268 = vector.broadcast %cst_128 : f32 to vector<32x32xf32>
    %269 = arith.select %267, %268, %265 : vector<32x32xi1>, vector<32x32xf32>
    %270 = vector.extract_strided_slice %262 {offsets = [1, 0], sizes = [31, 32], strides = [1, 1]} : vector<32x32xf32> to vector<31x32xf32>
    %cst_129 = arith.constant 0.000000e+00 : f32
    %271 = vector.broadcast %cst_129 : f32 to vector<1x32xf32>
    %272 = tpu.concatenate %270, %271 in 0 : vector<31x32xf32>, vector<1x32xf32> -> vector<32x32xf32>
    %cst_130 = arith.constant 0.000000e+00 : f32
    %273 = vector.shape_cast %20 : vector<32x1xi1> to vector<32x1xi1>
    %274 = vector.broadcast %273 : vector<32x1xi1> to vector<32x32xi1>
    %275 = vector.broadcast %cst_130 : f32 to vector<32x32xf32>
    %276 = arith.select %274, %275, %272 : vector<32x32xi1>, vector<32x32xf32>
    %277 = tpu.concatenate %269, %262, %276 in 1 : vector<32x32xf32>, vector<32x32xf32>, vector<32x32xf32> -> vector<32x96xf32>
    %c0_131 = arith.constant 0 : index
    %c0_132 = arith.constant 0 : index
    %278 = vector.load %arg17[%c0_131, %c0_132] : memref<96x32xf32, #tpu.memory_space<vmem>>, vector<96x32xf32>
    %cst_133 = arith.constant dense<0.000000e+00> : vector<32x32xf32>
    %279 = tpu.matmul %277, %278, %cst_133 {dimension_numbers = #tpu.dot_dimension_numbers<[1], [0], [0], [1], [0, 0, 1, 1], [], []>} : vector<32x96xf32>, vector<96x32xf32>, vector<32x32xf32> -> vector<32x32xf32>
    %c0_134 = arith.constant 0 : index
    %c0_135 = arith.constant 0 : index
    %280 = vector.load %arg18[%c0_134, %c0_135] : memref<1x32xf32, #tpu.memory_space<vmem>>, vector<1x32xf32>
    %281 = vector.broadcast %280 : vector<1x32xf32> to vector<32x32xf32>
    %282 = arith.addf %279, %281 : vector<32x32xf32>
    %cst_136 = arith.constant 0.000000e+00 : f32
    %283 = vector.broadcast %cst_136 : f32 to vector<32x32xf32>
    %284 = arith.maximumf %282, %283 : vector<32x32xf32>
    %285 = vector.extract_strided_slice %284 {offsets = [0, 0], sizes = [32, 16], strides = [1, 1]} : vector<32x32xf32> to vector<32x16xf32>
    %286 = vector.extract_strided_slice %284 {offsets = [0, 16], sizes = [32, 16], strides = [1, 1]} : vector<32x32xf32> to vector<32x16xf32>
    %cst_137 = arith.constant 0.000000e+00 : f32
    %287 = vector.broadcast %cst_137 : f32 to vector<1x16xf32>
    %288 = vector.extract_strided_slice %286 {offsets = [0, 0], sizes = [31, 16], strides = [1, 1]} : vector<32x16xf32> to vector<31x16xf32>
    %289 = tpu.concatenate %287, %288 in 0 : vector<1x16xf32>, vector<31x16xf32> -> vector<32x16xf32>
    %cst_138 = arith.constant 0.000000e+00 : f32
    %290 = vector.shape_cast %18 : vector<32x1xi1> to vector<32x1xi1>
    %291 = vector.broadcast %290 : vector<32x1xi1> to vector<32x16xi1>
    %292 = vector.broadcast %cst_138 : f32 to vector<32x16xf32>
    %293 = arith.select %291, %292, %289 : vector<32x16xi1>, vector<32x16xf32>
    %294 = vector.extract_strided_slice %285 {offsets = [1, 0], sizes = [31, 16], strides = [1, 1]} : vector<32x16xf32> to vector<31x16xf32>
    %cst_139 = arith.constant 0.000000e+00 : f32
    %295 = vector.broadcast %cst_139 : f32 to vector<1x16xf32>
    %296 = tpu.concatenate %294, %295 in 0 : vector<31x16xf32>, vector<1x16xf32> -> vector<32x16xf32>
    %cst_140 = arith.constant 0.000000e+00 : f32
    %297 = vector.shape_cast %20 : vector<32x1xi1> to vector<32x1xi1>
    %298 = vector.broadcast %297 : vector<32x1xi1> to vector<32x16xi1>
    %299 = vector.broadcast %cst_140 : f32 to vector<32x16xf32>
    %300 = arith.select %298, %299, %296 : vector<32x16xi1>, vector<32x16xf32>
    %301 = tpu.concatenate %293, %285, %286, %300 in 1 : vector<32x16xf32>, vector<32x16xf32>, vector<32x16xf32>, vector<32x16xf32> -> vector<32x64xf32>
    %c0_141 = arith.constant 0 : index
    %c0_142 = arith.constant 0 : index
    %302 = vector.load %arg19[%c0_141, %c0_142] : memref<64x4xf32, #tpu.memory_space<vmem>>, vector<64x4xf32>
    %cst_143 = arith.constant dense<0.000000e+00> : vector<32x4xf32>
    %303 = tpu.matmul %301, %302, %cst_143 {dimension_numbers = #tpu.dot_dimension_numbers<[1], [0], [0], [1], [0, 0, 1, 1], [], []>} : vector<32x64xf32>, vector<64x4xf32>, vector<32x4xf32> -> vector<32x4xf32>
    %c0_144 = arith.constant 0 : index
    %c0_145 = arith.constant 0 : index
    %304 = vector.load %arg20[%c0_144, %c0_145] : memref<1x4xf32, #tpu.memory_space<vmem>>, vector<1x4xf32>
    %305 = vector.broadcast %304 : vector<1x4xf32> to vector<32x4xf32>
    %306 = arith.addf %303, %305 : vector<32x4xf32>
    %c0_146 = arith.constant 0 : index
    %c0_147 = arith.constant 0 : index
    %307 = vector.load %arg21[%c0_146, %c0_147] : memref<32x4xf32, #tpu.memory_space<vmem>>, vector<32x4xf32>
    tpu.vector_store %arg21[%c0_146, %c0_147], %306 {strides = array<i32>} : memref<32x4xf32, #tpu.memory_space<vmem>>, vector<32x4xf32>,
    return
  }
}

</mosaic_0001>

<bundles_post_ra>
// kernel: vqvae_forward.1
= control target key start
LH: loop header
LB: loop body
LE: loop exit
PB: predicated region body
PF: predicated region fallthrough
CT: control target
= control target key end

     0   :  { %s4879_s0 = inlined_call_operand.vmem [shape: f32[64,4], index: 0, kind: input, shape index: {}]   ;;  %s4880_s1 = inlined_call_operand.vmem [shape: f32[4,16], index: 1, kind: input, shape index: {}]   ;;  %s4881_s2 = inlined_call_operand.vmem [shape: f32[1,16], index: 2, kind: input, shape index: {}]   ;;  %s4882_s3 = inlined_call_operand.vmem [shape: f32[64,32], index: 3, kind: input, shape index: {}]   ;;  %s4883_s4 = inlined_call_operand.vmem [shape: f32[1,32], index: 4, kind: input, shape index: {}]   ;;  %s4884_s5 = inlined_call_operand.vmem [shape: f32[96,32], index: 5, kind: input, shape index: {}]   ;;  %s4885_s6 = inlined_call_operand.vmem [shape: f32[1,32], index: 6, kind: input, shape index: {}]   ;;  %s4886_s7 = inlined_call_operand.vmem [shape: f32[2,96,16], index: 7, kind: input, shape index: {}]   ;;  %s4887_s8 = inlined_call_operand.vmem [shape: f32[2,16,32], index: 8, kind: input, shape index: {}]   ;;  %s4888_s9 = inlined_call_operand.vmem [shape: f32[32,16], index: 9, kind: input, shape index: {}]   ;;  %s4889_s10 = inlined_call_operand.vmem [shape: f32[1,16], index: 10, kind: input, shape index: {}]   ;;  %s4890_s11 = inlined_call_operand.vmem [shape: f32[16,64], index: 11, kind: input, shape index: {}]   ;;  %s4891_s12 = inlined_call_operand.vmem [shape: f32[64,16], index: 12, kind: input, shape index: {}]   ;;  %s4892_s13 = inlined_call_operand.vmem [shape: f32[48,32], index: 13, kind: input, shape index: {}]   ;;  %s4893_s14 = inlined_call_operand.vmem [shape: f32[1,32], index: 14, kind: input, shape index: {}]   ;;  %s4894_s15 = inlined_call_operand.vmem [shape: f32[2,96,16], index: 15, kind: input, shape index: {}]   ;;  %s4895_s16 = inlined_call_operand.vmem [shape: f32[2,16,32], index: 16, kind: input, shape index: {}]   ;;  %s4896_s17 = inlined_call_operand.vmem [shape: f32[96,32], index: 17, kind: input, shape index: {}]   ;;  %s4897_s18 = inlined_call_operand.vmem [shape: f32[1,32], index: 18, kind: input, shape index: {}]   ;;  %s4898_s19 = inlined_call_operand.vmem [shape: f32[64,4], index: 19, kind: input, shape index: {}]   ;;  %s4899_s20 = inlined_call_operand.vmem [shape: f32[1,4], index: 20, kind: input, shape index: {}]   ;;  %s4900_s21 = inlined_call_operand.vmem [shape: f32[32,4], index: 21, kind: output, shape index: {0}]   ;;  %s4901_s22 = inlined_call_operand.hbm [shape: f32[1,1], index: 22, kind: output, shape index: {1}]   ;;  %s4902_s23 = inlined_call_operand.hbm [shape: f32[1,1], index: 23, kind: output, shape index: {2}]   ;;  %s4903_s24 = inlined_call_operand.vmem [shape: s32[32,1], index: 24, kind: output, shape index: {3}]   ;;  %s4904_s25 = inlined_call_operand.hbm [shape: f32[32,64], index: 25, kind: output, shape index: {4}]  }
   0x1   :  { %4911 = sst [smem:[#allocation9_spill]] %s4879_s0 }
   0x2   :  { %4912 = sst [smem:[#allocation10_spill]] %s4880_s1 }
   0x3   :  { %4913 = sst [smem:[#allocation11_spill]] %s4881_s2 }
   0x4   :  { %4914 = sst [smem:[#allocation12_spill]] %s4882_s3 }
   0x5   :  { %4915 = sst [smem:[#allocation13_spill]] %s4883_s4 }
   0x6   :  { %4916 = sst [smem:[#allocation14_spill]] %s4884_s5 }
   0x7   :  { %4917 = sst [smem:[#allocation15_spill]] %s4885_s6 }
   0x8   :  { %4918 = sst [smem:[#allocation16_spill]] %s4886_s7 }
   0x9   :  { %4919 = sst [smem:[#allocation17_spill]] %s4887_s8 }
   0xa   :  { %4920 = sst [smem:[#allocation18_spill]] %s4888_s9 }
   0xb   :  { %31 = vsyncpa [#allocation3], 0  ;;  %s4921_s6 = sld [smem:[#allocation10_spill]]  ;;  %vm177_vm0 = vcmask 1043456   ;;  %vm152_vm1 = vcmask 31744  }
   0xc   :  { %s4922_s3 = sld [smem:[#allocation9_spill]] }
  0x11   :  { %v144_v0 = vld [vmem:[%s4921_s6] sm:$0xf] }
  0x12   :  { %v136_v1 = vld [vmem:[%s4922_s3] sm:$0xff]  ;;  %v137_v2 = vld [vmem:[%s4922_s3 + $0x8] sm:$0xff]  ;;  %3341 = vmatprep.subr.msk.mxu1 %vm177_vm0, %v144_v0  ;;  %v138_v3 = vld [vmem:[%s4922_s3 + $0x10] sm:$0xff] }
  0x13   :  { %3343 = vmatprep.mubr.msk.f32.mxu1 %vm152_vm1, %v136_v1  ;;  %3342 = vmatpush3.msk.msra.mxu1 %vm177_vm0, %v144_v0 }
  0x14   :  { %3344 = vmatmul.mubr.msk.f32.vlgmr.msra.gmra.mxu1 %vm152_vm1, %v137_v2 }
  0x15   :  { %32 = vsyncpa [#allocation5], 0  ;;  %3346 = vmatprep.mubr.msk.f32.mxu1 %vm152_vm1, %v138_v3  ;;  %v139_v4 = vld [vmem:[%s4922_s3 + $0x18] sm:$0xff]  ;;  %v140_v5 = vld [vmem:[%s4922_s3 + $0x20] sm:$0xff]  ;;  %s4923_s8 = sld [smem:[#allocation12_spill]]  ;;  %v75_v19 = vlaneseq  ;;  %s3768_s4 = smov 16  }
  0x16   :  { %v141_v6 = vld [vmem:[%s4922_s3 + $0x28] sm:$0xff]  ;;  %v142_v7 = vld [vmem:[%s4922_s3 + $0x30] sm:$0xff]  ;;  %v143_v8 = vld [vmem:[%s4922_s3 + $0x38] sm:$0xff]  ;;  %s4924_s2 = sld [smem:[#allocation11_spill]]  ;;  %vm327_vm2 = vcmask 1046528   ;;  %s3770_s5 = smov 48  }
  0x17   :  { %v3970_v27 = vshrl.u32 %v75_v19, 7  ;;  %vm298_vm3 = vcmask 1040384   ;;  %vm392_vm7 = vcmask 130048   ;;  %vm402_vm8 = vcmask 392192   ;;  %s4933_s29 = sld [smem:[#allocation14_spill]] }
  0x18   :  { %3347 = vmatmul.mubr.msk.f32.gmra.mxu1 %vm152_vm1, %v139_v4  ;;  %vm397_vm9 = vcmask 261120   ;;  %vm422_vm10 = vcmask 523264   ;;  %s4934_s28 = sld [smem:[#allocation13_spill]]  ;;  %vm615_vm12 = vcmask 785408  }
  0x19   :  { %3349 = vmatprep.mubr.msk.f32.mxu1 %vm152_vm1, %v140_v5  ;;  %v77_v33 = vadd.s32 8, %v3970_v27  ;;  %v79_v52 = vadd.s32 24, %v3970_v27  ;;  %s4935_s1 = sld [smem:[#allocation16_spill]] }
  0x1a   :  { %s4936_s27 = sld [smem:[#allocation15_spill]] }
  0x1b   :  { %v414_v9 = vld [vmem:[%s4923_s8 + $0x38] sm:$0xff]  ;;  %v413_v10 = vld [vmem:[%s4923_s8 + $0x30] sm:$0xff]  ;;  %v412_v11 = vld [vmem:[%s4923_s8 + $0x28] sm:$0xff]  ;;  %v91_v42 = vand.u32 15, %v77_v33  ;;  %v105_v60 = vand.u32 15, %v79_v52  ;;  %s4937_s30 = sld [smem:[#allocation17_spill]] }
  0x1c   :  { %3350 = vmatmul.mubr.msk.f32.gmra.mxu1 %vm152_vm1, %v141_v6  ;;  %3355 = vmatprep.subr.mxu1 %v414_v9  ;;  %v411_v12 = vld [vmem:[%s4923_s8 + $0x20] sm:$0xff]  ;;  %v410_v15 = vld [vmem:[%s4923_s8 + $0x18] sm:$0xff]  ;;  %v409_v16 = vld [vmem:[%s4923_s8 + $0x10] sm:$0xff]  ;;  %v84_v6 = vand.u32 15, %v3970_v27  ;;  %s4938_s9 = sld [smem:[#allocation18_spill]] }
  0x1d   :  { %3352 = vmatprep.mubr.msk.f32.mxu1 %vm152_vm1, %v142_v7  ;;  %3356 = vmatpush3.msra.mxu1 %v414_v9  ;;  %v3040_v13 = vld [vmem:[%s4924_s2] ss:$0 sm:$0xff]  ;;  %v408_v23 = vld [vmem:[%s4923_s8 + $0x8] sm:$0xff]  ;;  %vm3981_vm4 = vcmp.eq.s32.totalorder %v91_v42, 15  ;;  %vm3999_vm5 = vcmp.eq.s32.totalorder %v105_v60, 15  ;;  %v78_v7 = vadd.s32 16, %v3970_v27 }
  0x1e   :  { %3357 = vmatprep.subr.mxu1 %v413_v10  ;;  %v407_v28 = vld [vmem:[%s4923_s8] sm:$0xff]  ;;  %s3769_s8 = smov 32   ;;  %vm4010_vm6 = vcmp.eq.s32.totalorder %v84_v6, 0  ;;  %v529_v42 = vld [vmem:[%s4933_s29 + $0x28] sm:$0xff] }
  0x1f   :  { %3358 = vmatpush3.msra.mxu1 %v413_v10  ;;  %v524_v52 = vld [vmem:[%s4933_s29] sm:$0xff] }
  0x20   :  { %3353 = vmatmul.mubr.msk.f32.gmra.mxu1 %vm152_vm1, %v143_v8  ;;  %3359 = vmatprep.subr.mxu1 %v412_v11 }
  0x21   :  { %3360 = vmatpush3.msra.mxu1 %v412_v11 }
  0x22   :  { %3361 = vmatprep.subr.mxu1 %v411_v12 }
  0x23   :  { %3362 = vmatpush3.msra.mxu1 %v411_v12 }
  0x24   :  { %3363 = vmatprep.subr.mxu1 %v410_v15 }
  0x25   :  { %3364 = vmatpush3.msra.mxu1 %v410_v15 }
  0x26   :  { %3365 = vmatprep.subr.mxu1 %v409_v16 }
  0x27   :  { %3366 = vmatpush3.msra.mxu1 %v409_v16 }
  0x28   :  { %3367 = vmatprep.subr.mxu1 %v408_v23 }
  0x29   :  { %3368 = vmatpush3.msra.mxu1 %v408_v23 }
  0x2a   :  { %3369 = vmatprep.subr.mxu1 %v407_v28 }
  0x2b   :  { %3370 = vmatpush3.msra.mxu1 %v407_v28 }
  0xd4   :  { %v3345_v14 = vpop.f32.mrf.mxu1 }
  0xd5   :  { %v253_v17 = vadd.f32 %v3345_v14, %v3040_v13 }
  0xd6   :  { %v247_v18 = vpop.f32.mrf.mxu1 }
  0xd7   :  { %v287_v20 = vmax.f32 %v253_v17, 0.0  ;;  %v248_v21 = vadd.f32 %v3040_v13, %v247_v18 }
  0xd8   :  { %v3348_v22 = vpop.f32.mrf.mxu1 }
  0xd9   :  { %v286_v24 = vmax.f32 %v248_v21, 0.0  ;;  %v263_v25 = vadd.f32 %v3348_v22, %v3040_v13  ;;  %354 = vrot.lane.b32.xlu0 %v287_v20, %s3768_s4  ;;  %v329_v36 = vrot.slane %v287_v20, 1 }
  0xda   :  { %v257_v26 = vpop.f32.mrf.mxu1 }
  0xdb   :  { %v289_v29 = vmax.f32 %v263_v25, 0.0  ;;  %v258_v30 = vadd.f32 %v3040_v13, %v257_v26  ;;  %v328_v31 = vrot.slane %v286_v24, 1 }
  0xdc   :  { %v3351_v32 = vpop.f32.mrf.mxu1 }
  0xdd   :  { %v288_v34 = vmax.f32 %v258_v30, 0.0  ;;  %v273_v35 = vadd.f32 %v3351_v32, %v3040_v13  ;;  %358 = vrot.lane.b32.xlu1 %v289_v29, %s3768_s4  ;;  %352 = vrot.lane.b32.xlu0 %v286_v24, %s3768_s4  ;;  %v330_v41 = vsel %vm327_vm2, %v328_v31, %v329_v36  ;;  %v333_v59 = vrot.slane %v289_v29, 1 }
  0xde   :  { %v267_v37 = vpop.f32.mrf.mxu1 }
  0xdf   :  { %v291_v38 = vmax.f32 %v273_v35, 0.0  ;;  %v268_v39 = vadd.f32 %v3040_v13, %v267_v37  ;;  %v331_v43 = vrot.slane %v288_v34, 1  ;;  %v339_v1 = vsel %vm327_vm2, %v333_v59, 0.0  ;;  %v534_v37 = vld [vmem:[%s4933_s29 + $0x50] sm:$0xff] }
  0xe0   :  { %v3354_v40 = vpop.f32.mrf.mxu1  ;;  %v351_v2 = vsel %vm3999_vm5, 0.0, %v339_v1 }
  0xe1   :  { %v290_v44 = vmax.f32 %v268_v39, 0.0  ;;  %v283_v45 = vadd.f32 %v3354_v40, %v3040_v13  ;;  %366 = vrot.lane.b32.xlu1 %v291_v38, %s3769_s8  ;;  %380 = vrot.lane.b32.xlu0 %v330_v41, %s3770_s5  ;;  %v300_v47 = vrot.slane %v291_v38, 7  ;;  %v332_v55 = vsel %vm327_vm2, %v329_v36, %v331_v43  ;;  %v535_v36 = vld [vmem:[%s4933_s29 + $0x58] sm:$0xff]  ;;  %v533_v38 = vld [vmem:[%s4933_s29 + $0x48] sm:$0xff] }
  0xe2   :  { %v277_v46 = vpop.f32.mrf.mxu1  ;;  %v349_v58 = vsel %vm3981_vm4, 0.0, %v332_v55  ;;  %v334_v63 = vsel %vm327_vm2, %v331_v43, %v333_v59  ;;  %3377 = vmatprep.subr.mxu0 %v535_v36  ;;  %v532_v39 = vld [vmem:[%s4933_s29 + $0x40] sm:$0xff]  ;;  %v531_v40 = vld [vmem:[%s4933_s29 + $0x38] sm:$0xff]  ;;  %v530_v41 = vld [vmem:[%s4933_s29 + $0x30] sm:$0xff] }
  0xe3   :  { %v299_v48 = vrot.slane %v290_v44, 7  ;;  %v293_v49 = vmax.f32 %v283_v45, 0.0  ;;  %v278_v50 = vadd.f32 %v3040_v13, %v277_v46  ;;  %v98_v13 = vand.u32 15, %v78_v7  ;;  %3378 = vmatpush3.msra.mxu0 %v535_v36  ;;  %v528_v43 = vld [vmem:[%s4933_s29 + $0x20] sm:$0xff] }
  0xe4   :  { %3379 = vmatprep.subr.mxu0 %v534_v37  ;;  %v3050_v45 = vld [vmem:[%s4934_s28] ss:$0 sm:$0xff] }
  0xe5   :  { %v304_v53 = vrot.slane %v293_v49, 7  ;;  %v292_v54 = vmax.f32 %v278_v50, 0.0  ;;  %364 = vrot.lane.b32.xlu1 %v290_v44, %s3769_s8  ;;  %356 = vrot.lane.b32.xlu0 %v288_v34, %s3768_s4  ;;  %v301_v56 = vsel %vm298_vm3, %v299_v48, %v300_v47  ;;  %v310_v8 = vsel %vm298_vm3, 0.0, %v299_v48  ;;  %v527_v44 = vld [vmem:[%s4933_s29 + $0x18] sm:$0xff]  ;;  %v525_v50 = vld [vmem:[%s4933_s29 + $0x8] sm:$0xff] }
  0xe6   :  { %v319_v12 = vsel %vm4010_vm6, 0.0, %v310_v8  ;;  %vm4020_vm11 = vcmp.eq.s32.totalorder %v98_v13, 0  ;;  %3380 = vmatpush3.msra.mxu0 %v534_v37 }
  0xe7   :  { %v302_v57 = vrot.slane %v292_v54, 7  ;;  %3381 = vmatprep.subr.mxu0 %v533_v38 }
  0xe8   :  { %3382 = vmatpush3.msra.mxu0 %v533_v38  ;;  %v728_v38 = vld [vmem:[%s4935_s1 + $0x58] sm:$0xff] }
  0xe9   :  { %368 = vrot.lane.b32.xlu0 %v292_v54, %s3769_s8  ;;  %382 = vrot.lane.b32.xlu1 %v349_v58, %s3770_s5  ;;  %v305_v61 = vsel %vm298_vm3, %v302_v57, %v304_v53  ;;  %v303_v62 = vsel %vm298_vm3, %v300_v47, %v302_v57  ;;  %v526_v47 = vld [vmem:[%s4933_s29 + $0x10] sm:$0xff]  ;;  %s3771_s29 = smov 64  }
  0xea   :  { %v321_v26 = vsel %vm4020_vm11, 0.0, %v303_v62  ;;  %3383 = vmatprep.subr.mxu0 %v532_v39  ;;  %3407 = vmatprep.subr.mxu1 %v728_v38 }
  0xeb   :  { %3384 = vmatpush3.msra.mxu0 %v532_v39  ;;  %v727_v39 = vld [vmem:[%s4935_s1 + $0x50] sm:$0xff] }
  0xec   :  { %3385 = vmatprep.subr.mxu0 %v531_v40 }
  0xed   :  { %384 = vrot.lane.b32.xlu0 %v334_v63, %s3770_s5  ;;  %370 = vrot.lane.b32.xlu1 %v293_v49, %s3769_s8 }
  0xee   :  { %3386 = vmatpush3.msra.mxu0 %v531_v40  ;;  %v726_v40 = vld [vmem:[%s4935_s1 + $0x48] sm:$0xff] }
  0xef   :  { %3387 = vmatprep.subr.mxu0 %v530_v41 }
  0xf0   :  { %3388 = vmatpush3.msra.mxu0 %v530_v41  ;;  %v725_v41 = vld [vmem:[%s4935_s1 + $0x40] sm:$0xff] }
  0xf1   :  { %386 = vrot.lane.b32.xlu1 %v351_v2, %s3770_s5  ;;  %3389 = vmatprep.subr.mxu0 %v529_v42 }
  0xf2   :  { %3390 = vmatpush3.msra.mxu0 %v529_v42  ;;  %v724_v42 = vld [vmem:[%s4935_s1 + $0x38] sm:$0xff] }
  0xf3   :  { %3391 = vmatprep.subr.mxu0 %v528_v43 }
  0xf4   :  { %3392 = vmatpush3.msra.mxu0 %v528_v43  ;;  %v723_v43 = vld [vmem:[%s4935_s1 + $0x30] sm:$0xff] }
  0xf5   :  { %3393 = vmatprep.subr.mxu0 %v527_v44 }
  0xf6   :  { %3394 = vmatpush3.msra.mxu0 %v527_v44  ;;  %v722_v44 = vld [vmem:[%s4935_s1 + $0x28] sm:$0xff] }
  0xf7   :  { %3395 = vmatprep.subr.mxu0 %v526_v47 }
  0xf8   :  { %3396 = vmatpush3.msra.mxu0 %v526_v47  ;;  %v719_v47 = vld [vmem:[%s4935_s1 + $0x10] sm:$0xff] }
  0xf9   :  { %3397 = vmatprep.subr.mxu0 %v525_v50 }
  0xfa   :  { %3398 = vmatpush3.msra.mxu0 %v525_v50  ;;  %v717_v50 = vld [vmem:[%s4935_s1] sm:$0xff] }
  0xfb   :  { %3399 = vmatprep.subr.mxu0 %v524_v52 }
  0xfc   :  { %3400 = vmatpush3.msra.mxu0 %v524_v52 }
 0x14b   :  { %v355_v3 = vpop.permute.xlu0 %354 }
 0x14c   :  { %v394_v20 = vsel %vm392_vm7, %v301_v56, %v355_v3 }
 0x14f   :  { %v359_v4 = vpop.permute.xlu1 %358  ;;  %v353_v5 = vpop.permute.xlu0 %352 }
 0x150   :  { %v393_v14 = vsel %vm392_vm7, %v319_v12, %v353_v5  ;;  %v396_v32 = vsel %vm392_vm7, %v305_v61, %v359_v4 }
 0x153   :  { %v367_v10 = vpop.permute.xlu1 %366  ;;  %v381_v11 = vpop.permute.xlu0 %380 }
 0x154   :  { %v399_v22 = vsel %vm397_vm9, %v394_v20, %v367_v10 }
 0x157   :  { %v365_v15 = vpop.permute.xlu1 %364  ;;  %v357_v16 = vpop.permute.xlu0 %356 }
 0x158   :  { %v398_v17 = vsel %vm397_vm9, %v393_v14, %v365_v15  ;;  %v395_v27 = vsel %vm392_vm7, %v321_v26, %v357_v16 }
 0x159   :  { %v403_v18 = vsel %vm402_vm8, %v398_v17, %v381_v11 }
 0x15a   :  { %3371 = vmatprep.mubr.msk.f32.mxu1 %vm422_vm10, %v403_v18 }
 0x15b   :  { %v369_v23 = vpop.permute.xlu0 %368  ;;  %v383_v24 = vpop.permute.xlu1 %382 }
 0x15c   :  { %v404_v25 = vsel %vm402_vm8, %v399_v22, %v383_v24  ;;  %v400_v28 = vsel %vm397_vm9, %v395_v27, %v369_v23 }
 0x15d   :  { %3372 = vmatmul.mubr.msk.f32.vlgmr.msra.gmra.mxu1 %vm422_vm10, %v404_v25 }
 0x15e   :  { %3408 = vmatpush3.msra.mxu1 %v728_v38 }
 0x15f   :  { %v385_v29 = vpop.permute.xlu0 %384  ;;  %v371_v30 = vpop.permute.xlu1 %370  ;;  %3409 = vmatprep.subr.mxu1 %v727_v39 }
 0x160   :  { %v405_v31 = vsel %vm402_vm8, %v400_v28, %v385_v29  ;;  %v401_v33 = vsel %vm397_vm9, %v396_v32, %v371_v30  ;;  %3410 = vmatpush3.msra.mxu1 %v727_v39 }
 0x161   :  { %3374 = vmatprep.mubr.msk.f32.mxu1 %vm422_vm10, %v405_v31  ;;  %3411 = vmatprep.subr.mxu1 %v726_v40 }
 0x162   :  { %3412 = vmatpush3.msra.mxu1 %v726_v40 }
 0x163   :  { %v387_v34 = vpop.permute.xlu1 %386  ;;  %3413 = vmatprep.subr.mxu1 %v725_v41 }
 0x164   :  { %v406_v35 = vsel %vm402_vm8, %v401_v33, %v387_v34  ;;  %3414 = vmatpush3.msra.mxu1 %v725_v41  ;;  %v902_v41 = vld [vmem:[%s4937_s30] sm:$0xff] }
 0x165   :  { %3375 = vmatmul.mubr.msk.f32.gmra.mxu1 %vm422_vm10, %v406_v35  ;;  %3415 = vmatprep.subr.mxu1 %v724_v42 }
 0x166   :  { %3416 = vmatpush3.msra.mxu1 %v724_v42 }
 0x167   :  { %3417 = vmatprep.subr.mxu1 %v723_v43 }
 0x168   :  { %3418 = vmatpush3.msra.mxu1 %v723_v43 }
 0x169   :  { %3419 = vmatprep.subr.mxu1 %v722_v44 }
 0x16a   :  { %3420 = vmatpush3.msra.mxu1 %v722_v44 }
 0x21d   :  { %v3373_v46 = vpop.f32.mrf.mxu1 }
 0x21e   :  { %v507_v48 = vadd.f32 %v3373_v46, %v3050_v45  ;;  %v720_v46 = vld [vmem:[%s4935_s1 + $0x18] sm:$0xff] }
 0x21f   :  { %v501_v49 = vpop.f32.mrf.mxu1 }
 0x220   :  { %v521_v53 = vmax.f32 %v507_v48, 0.0  ;;  %v502_v54 = vadd.f32 %v3050_v45, %v501_v49  ;;  %v3055_v48 = vld [vmem:[%s4936_s27] ss:$0 sm:$0xff]  ;;  %v718_v49 = vld [vmem:[%s4935_s1 + $0x8] sm:$0xff] }
 0x222   :  { %v520_v55 = vmax.f32 %v502_v54, 0.0  ;;  %575 = vrot.lane.b32.xlu1 %v521_v53, %s3769_s8  ;;  %v542_v56 = vrot.slane %v521_v53, 7  ;;  %v558_v57 = vrot.slane %v521_v53, 1 }
 0x224   :  { %v541_v58 = vrot.slane %v520_v55, 7  ;;  %v557_v59 = vrot.slane %v520_v55, 1  ;;  %573 = vrot.lane.b32.xlu0 %v520_v55, %s3769_s8 }
 0x225   :  { %v3376_v60 = vpop.f32.mrf.mxu1 }
 0x226   :  { %v517_v61 = vadd.f32 %v3376_v60, %v3050_v45  ;;  %v559_v62 = vsel %vm327_vm2, %v557_v59, %v558_v57  ;;  %v543_v63 = vsel %vm298_vm3, %v541_v58, %v542_v56  ;;  %v552_v18 = vsel %vm298_vm3, 0.0, %v541_v58 }
 0x227   :  { %v511_v1 = vpop.f32.mrf.mxu1  ;;  %v553_v20 = vsel %vm4010_vm6, 0.0, %v552_v18 }
 0x228   :  { %v523_v2 = vmax.f32 %v517_v61, 0.0  ;;  %v512_v3 = vadd.f32 %v3050_v45, %v511_v1  ;;  %589 = vrot.lane.b32.xlu0 %v559_v62, %s3771_s29  ;;  %v721_v45 = vld [vmem:[%s4935_s1 + $0x20] sm:$0xff] }
 0x229   :  { %3421 = vmatprep.subr.mxu1 %v721_v45 }
 0x22a   :  { %v522_v4 = vmax.f32 %v512_v3, 0.0  ;;  %579 = vrot.lane.b32.xlu1 %v523_v2, %s3769_s8  ;;  %v546_v5 = vrot.slane %v523_v2, 7  ;;  %v562_v6 = vrot.slane %v523_v2, 1  ;;  %3422 = vmatpush3.msra.mxu1 %v721_v45 }
 0x22b   :  { %3423 = vmatprep.subr.mxu1 %v720_v46 }
 0x22c   :  { %v544_v7 = vrot.slane %v522_v4, 7  ;;  %v560_v8 = vrot.slane %v522_v4, 1  ;;  %577 = vrot.lane.b32.xlu0 %v522_v4, %s3769_s8  ;;  %v568_v15 = vsel %vm327_vm2, %v562_v6, 0.0  ;;  %3424 = vmatpush3.msra.mxu1 %v720_v46  ;;  %v903_v4 = vld [vmem:[%s4937_s30 + $0x8] sm:$0xff] }
 0x22d   :  { %v572_v16 = vsel %vm3999_vm5, 0.0, %v568_v15  ;;  %3425 = vmatprep.subr.mxu1 %v719_v47  ;;  %3437 = vmatprep.subr.mxu0 %v903_v4 }
 0x22e   :  { %v563_v10 = vsel %vm327_vm2, %v560_v8, %v562_v6  ;;  %v561_v11 = vsel %vm327_vm2, %v558_v57, %v560_v8  ;;  %v547_v12 = vsel %vm298_vm3, %v544_v7, %v546_v5  ;;  %v545_v13 = vsel %vm298_vm3, %v542_v56, %v544_v7  ;;  %3426 = vmatpush3.msra.mxu1 %v719_v47 }
 0x22f   :  { %v570_v14 = vsel %vm3981_vm4, 0.0, %v561_v11  ;;  %v555_v28 = vsel %vm4020_vm11, 0.0, %v545_v13  ;;  %3427 = vmatprep.subr.mxu1 %v718_v49 }
 0x230   :  { %593 = vrot.lane.b32.xlu0 %v563_v10, %s3771_s29  ;;  %591 = vrot.lane.b32.xlu1 %v570_v14, %s3771_s29 }
 0x231   :  { %3428 = vmatpush3.msra.mxu1 %v718_v49 }
 0x232   :  { %3429 = vmatprep.subr.mxu1 %v717_v50 }
 0x233   :  { %3430 = vmatpush3.msra.mxu1 %v717_v50  ;;  %v3079_v50 = vld [vmem:[%s4935_s1 + $0xb8] sm:$0xff] }
 0x234   :  { %595 = vrot.lane.b32.xlu1 %v572_v16, %s3771_s29 }
 0x294   :  { %v576_v22 = vpop.permute.xlu1 %575 }
 0x295   :  { %v602_v29 = vsel %vm397_vm9, %v543_v63, %v576_v22 }
 0x296   :  { %v574_v17 = vpop.permute.xlu0 %573 }
 0x297   :  { %v601_v23 = vsel %vm397_vm9, %v553_v20, %v574_v17 }
 0x29a   :  { %v590_v24 = vpop.permute.xlu0 %589 }
 0x29b   :  { %v605_v25 = vsel %vm422_vm10, %v601_v23, %v590_v24 }
 0x29c   :  { %3401 = vmatprep.mubr.msk.f32.mxu0 %vm615_vm12, %v605_v25  ;;  %v580_v26 = vpop.permute.xlu1 %579 }
 0x29d   :  { %v604_v35 = vsel %vm397_vm9, %v547_v12, %v580_v26 }
 0x29e   :  { %v578_v27 = vpop.permute.xlu0 %577 }
 0x29f   :  { %v603_v30 = vsel %vm397_vm9, %v555_v28, %v578_v27 }
 0x2a2   :  { %v594_v31 = vpop.permute.xlu0 %593  ;;  %v592_v32 = vpop.permute.xlu1 %591 }
 0x2a3   :  { %v607_v33 = vsel %vm422_vm10, %v603_v30, %v594_v31  ;;  %v606_v34 = vsel %vm422_vm10, %v602_v29, %v592_v32 }
 0x2a4   :  { %3402 = vmatmul.mubr.msk.f32.vlgmr.msra.gmra.mxu0 %vm615_vm12, %v606_v34 }
 0x2a5   :  { %3404 = vmatprep.mubr.msk.f32.mxu0 %vm615_vm12, %v607_v33  ;;  %3438 = vmatpush3.msra.mxu0 %v903_v4 }
 0x2a6   :  { %v596_v36 = vpop.permute.xlu1 %595  ;;  %3439 = vmatprep.subr.mxu0 %v902_v41 }
 0x2a7   :  { %v608_v37 = vsel %vm422_vm10, %v604_v35, %v596_v36  ;;  %3440 = vmatpush3.msra.mxu0 %v902_v41 }
 0x2a8   :  { %3405 = vmatmul.mubr.msk.f32.gmra.mxu0 %vm615_vm12, %v608_v37  ;;  %3447 = vmatprep.subr.mxu0 %v3079_v50 }
 0x364   :  { %v3403_v52 = vpop.f32.mrf.mxu0 }
 0x365   :  { %v4152_v53 = vadd.f32 %v3403_v52, %v3055_v48  ;;  %v3078_v52 = vld [vmem:[%s4935_s1 + $0xb0] sm:$0xff] }
 0x366   :  { %v694_v54 = vpop.f32.mrf.mxu0 }
 0x367   :  { %v714_v55 = vmax.f32 %v4152_v53, 0.0  ;;  %v4155_v56 = vadd.f32 %v3055_v48, %v694_v54  ;;  %v3077_v54 = vld [vmem:[%s4935_s1 + $0xa8] sm:$0xff] }
 0x368   :  { %v3406_v57 = vpop.f32.mrf.mxu0 }
 0x369   :  { %v713_v58 = vmax.f32 %v4155_v56, 0.0  ;;  %v4158_v59 = vadd.f32 %v3406_v57, %v3055_v48  ;;  %767 = vrot.lane.b32.xlu1 %v714_v55, %s3769_s8  ;;  %v750_v61 = vrot.slane %v714_v55, 1  ;;  %v734_v3 = vrot.slane %v714_v55, 7  ;;  %v3076_v55 = vld [vmem:[%s4935_s1 + $0xa0] sm:$0xff]  ;;  %v3075_v57 = vld [vmem:[%s4935_s1 + $0x98] sm:$0xff] }
 0x36a   :  { %v704_v60 = vpop.f32.mrf.mxu0 }
 0x36b   :  { %v733_v62 = vrot.slane %v713_v58, 7  ;;  %v716_v63 = vmax.f32 %v4158_v59, 0.0  ;;  %v4162_v1 = vadd.f32 %v3055_v48, %v704_v60  ;;  %765 = vrot.lane.b32.xlu0 %v713_v58, %s3769_s8  ;;  %v749_v2 = vrot.slane %v713_v58, 1  ;;  %v3074_v58 = vld [vmem:[%s4935_s1 + $0x90] sm:$0xff]  ;;  %v3073_v60 = vld [vmem:[%s4935_s1 + $0x88] sm:$0xff] }
 0x36d   :  { %v715_v5 = vmax.f32 %v4162_v1, 0.0  ;;  %771 = vrot.lane.b32.xlu1 %v716_v63, %s3769_s8  ;;  %v751_v6 = vsel %vm327_vm2, %v749_v2, %v750_v61  ;;  %v735_v7 = vsel %vm298_vm3, %v733_v62, %v734_v3  ;;  %v738_v8 = vrot.slane %v716_v63, 7  ;;  %v3069_v2 = vld [vmem:[%s4935_s1 + $0x68] sm:$0xff] }
 0x36e   :  { %v754_v12 = vrot.slane %v716_v63, 1  ;;  %v744_v24 = vsel %vm298_vm3, 0.0, %v733_v62  ;;  %v3071_v62 = vld [vmem:[%s4935_s1 + $0x78] sm:$0xff]  ;;  %v3070_v63 = vld [vmem:[%s4935_s1 + $0x70] sm:$0xff] }
 0x36f   :  { %v736_v10 = vrot.slane %v715_v5, 7  ;;  %v752_v11 = vrot.slane %v715_v5, 1  ;;  %781 = vrot.lane.b32.xlu0 %v751_v6, %s3771_s29  ;;  %v745_v25 = vsel %vm4010_vm6, 0.0, %v744_v24  ;;  %v3068_v6 = vld [vmem:[%s4935_s1 + $0x60] sm:$0xff] }
 0x370   :  { %v760_v17 = vsel %vm327_vm2, %v754_v12, 0.0 }
 0x371   :  { %v753_v13 = vsel %vm327_vm2, %v750_v61, %v752_v11  ;;  %v739_v14 = vsel %vm298_vm3, %v736_v10, %v738_v8  ;;  %v737_v15 = vsel %vm298_vm3, %v734_v3, %v736_v10  ;;  %v755_v18 = vsel %vm327_vm2, %v752_v11, %v754_v12  ;;  %v3072_v61 = vld [vmem:[%s4935_s1 + $0x80] sm:$0xff] }
 0x372   :  { %v762_v16 = vsel %vm3981_vm4, 0.0, %v753_v13  ;;  %v764_v20 = vsel %vm3999_vm5, 0.0, %v760_v17  ;;  %v747_v34 = vsel %vm4020_vm11, 0.0, %v737_v15 }
 0x373   :  { %769 = vrot.lane.b32.xlu0 %v715_v5, %s3769_s8  ;;  %783 = vrot.lane.b32.xlu1 %v762_v16, %s3771_s29 }
 0x377   :  { %785 = vrot.lane.b32.xlu0 %v755_v18, %s3771_s29  ;;  %787 = vrot.lane.b32.xlu1 %v764_v20, %s3771_s29  ;;  %v3085_v18 = vld [vmem:[%s4937_s30 + $0x18] sm:$0xff] }
 0x378   :  { %3477 = vmatprep.subr.mxu1 %v3085_v18 }
 0x3db   :  { %v768_v22 = vpop.permute.xlu1 %767 }
 0x3dc   :  { %v794_v30 = vsel %vm397_vm9, %v735_v7, %v768_v22 }
 0x3dd   :  { %v766_v23 = vpop.permute.xlu0 %765 }
 0x3de   :  { %v793_v26 = vsel %vm397_vm9, %v745_v25, %v766_v23 }
 0x3df   :  { %v772_v27 = vpop.permute.xlu1 %771 }
 0x3e0   :  { %v796_v35 = vsel %vm397_vm9, %v739_v14, %v772_v27 }
 0x3e1   :  { %v782_v28 = vpop.permute.xlu0 %781 }
 0x3e2   :  { %v797_v29 = vsel %vm422_vm10, %v793_v26, %v782_v28 }
 0x3e3   :  { %3431 = vmatprep.mubr.msk.f32.mxu1 %vm615_vm12, %v797_v29 }
 0x3e5   :  { %v770_v31 = vpop.permute.xlu0 %769  ;;  %v784_v32 = vpop.permute.xlu1 %783 }
 0x3e6   :  { %v798_v33 = vsel %vm422_vm10, %v794_v30, %v784_v32  ;;  %v795_v36 = vsel %vm397_vm9, %v747_v34, %v770_v31 }
 0x3e7   :  { %3432 = vmatmul.mubr.msk.f32.vlgmr.msra.gmra.mxu1 %vm615_vm12, %v798_v33 }
 0x3e8   :  { %3478 = vmatpush3.msra.mxu1 %v3085_v18 }
 0x3e9   :  { %v786_v37 = vpop.permute.xlu0 %785  ;;  %v788_v38 = vpop.permute.xlu1 %787 }
 0x3ea   :  { %v799_v39 = vsel %vm422_vm10, %v795_v36, %v786_v37  ;;  %v800_v40 = vsel %vm422_vm10, %v796_v35, %v788_v38 }
 0x3eb   :  { %3434 = vmatprep.mubr.msk.f32.mxu1 %vm615_vm12, %v799_v39 }
 0x3ec   :  { %3435 = vmatmul.mubr.msk.f32.gmra.mxu1 %vm615_vm12, %v800_v40 }
 0x4a7   :  { %v3433_v42 = vpop.f32.mrf.mxu1 }
 0x4a8   :  { %v899_v45 = vmax.f32 %v3433_v42, 0.0 }
 0x4a9   :  { %v879_v43 = vpop.f32.mrf.mxu1 }
 0x4aa   :  { %v898_v44 = vmax.f32 %v879_v43, 0.0 }
 0x4ac   :  { %v3436_v46 = vpop.f32.mrf.mxu1  ;;  %3441 = vmatprep.mubr.msk.f32.mxu0 %vm392_vm7, %v898_v44 }
 0x4ad   :  { %3442 = vmatmul.mubr.msk.f32.vlgmr.msra.gmra.mxu0 %vm392_vm7, %v899_v45  ;;  %v901_v49 = vmax.f32 %v3436_v46, 0.0 }
 0x4ae   :  { %v889_v47 = vpop.f32.mrf.mxu1  ;;  %3448 = vmatpush3.msra.mxu0 %v3079_v50 }
 0x4af   :  { %v900_v48 = vmax.f32 %v889_v47, 0.0  ;;  %3449 = vmatprep.subr.mxu0 %v3078_v52 }
 0x4b0   :  { %3450 = vmatpush3.msra.mxu0 %v3078_v52 }
 0x4b1   :  { %3444 = vmatprep.mubr.msk.f32.mxu0 %vm392_vm7, %v900_v48  ;;  %3451 = vmatprep.subr.mxu0 %v3077_v54 }
 0x4b2   :  { %3445 = vmatmul.mubr.msk.f32.gmra.mxu0 %vm392_vm7, %v901_v49 }
 0x4b3   :  { %3452 = vmatpush3.msra.mxu0 %v3077_v54  ;;  %v3084_v54 = vld [vmem:[%s4937_s30 + $0x10] sm:$0xff] }
 0x4b4   :  { %3453 = vmatprep.subr.mxu0 %v3076_v55  ;;  %3479 = vmatprep.subr.mxu1 %v3084_v54 }
 0x4b5   :  { %3454 = vmatpush3.msra.mxu0 %v3076_v55  ;;  %3480 = vmatpush3.msra.mxu1 %v3084_v54  ;;  %v1306_v55 = vld [vmem:[%s4938_s9 + $0x18] sm:$0xff] }
 0x4b6   :  { %3455 = vmatprep.subr.mxu0 %v3075_v57  ;;  %3487 = vmatprep.subr.mxu1 %v1306_v55 }
 0x4b7   :  { %3456 = vmatpush3.msra.mxu0 %v3075_v57 }
 0x4b8   :  { %3457 = vmatprep.subr.mxu0 %v3074_v58 }
 0x4b9   :  { %3458 = vmatpush3.msra.mxu0 %v3074_v58 }
 0x4ba   :  { %3459 = vmatprep.subr.mxu0 %v3073_v60 }
 0x4bb   :  { %3460 = vmatpush3.msra.mxu0 %v3073_v60 }
 0x4bc   :  { %3461 = vmatprep.subr.mxu0 %v3072_v61 }
 0x4bd   :  { %3462 = vmatpush3.msra.mxu0 %v3072_v61 }
 0x4be   :  { %3463 = vmatprep.subr.mxu0 %v3071_v62 }
 0x4bf   :  { %3464 = vmatpush3.msra.mxu0 %v3071_v62 }
 0x4c0   :  { %3465 = vmatprep.subr.mxu0 %v3070_v63 }
 0x4c1   :  { %3466 = vmatpush3.msra.mxu0 %v3070_v63 }
 0x4c2   :  { %3467 = vmatprep.subr.mxu0 %v3069_v2 }
 0x4c3   :  { %3468 = vmatpush3.msra.mxu0 %v3069_v2 }
 0x4c4   :  { %3469 = vmatprep.subr.mxu0 %v3068_v6 }
 0x4c5   :  { %3470 = vmatpush3.msra.mxu0 %v3068_v6  ;;  %v1304_v6 = vld [vmem:[%s4938_s9 + $0x8] sm:$0xff] }
 0x56d   :  { %v3443_v3 = vpop.f32.mrf.mxu0 }
 0x56e   :  { %v4244_v4 = vadd.f32 %v3443_v3, %v4152_v53 }
 0x56f   :  { %v982_v5 = vpop.f32.mrf.mxu0 }
 0x570   :  { %v1006_v7 = vmax.f32 %v4244_v4, 0.0  ;;  %v4251_v8 = vadd.f32 %v982_v5, %v4155_v56  ;;  %v1305_v5 = vld [vmem:[%s4938_s9 + $0x10] sm:$0xff] }
 0x572   :  { %v1005_v10 = vmax.f32 %v4251_v8, 0.0  ;;  %1060 = vrot.lane.b32.xlu1 %v1006_v7, %s3769_s8  ;;  %v3446_v53 = vpop.f32.mrf.mxu0  ;;  %v1027_v12 = vrot.slane %v1006_v7, 7  ;;  %v1043_v16 = vrot.slane %v1006_v7, 1  ;;  %v1303_v7 = vld [vmem:[%s4938_s9] sm:$0xff] }
 0x573   :  { %v4256_v11 = vadd.f32 %v3446_v53, %v4158_v59 }
 0x574   :  { %v1026_v13 = vrot.slane %v1005_v10, 7  ;;  %1058 = vrot.lane.b32.xlu0 %v1005_v10, %s3769_s8  ;;  %v992_v14 = vpop.f32.mrf.mxu0  ;;  %v1042_v15 = vrot.slane %v1005_v10, 1  ;;  %v1412_v10 = vld [vmem:[%s4890_s11 + $0x8] sm:$0xff] }
 0x575   :  { %v1008_v56 = vmax.f32 %v4256_v11, 0.0  ;;  %v4261_v17 = vadd.f32 %v992_v14, %v4162_v1 }
 0x576   :  { %v1044_v20 = vsel %vm327_vm2, %v1042_v15, %v1043_v16  ;;  %v1028_v59 = vsel %vm298_vm3, %v1026_v13, %v1027_v12  ;;  %v1037_v35 = vsel %vm298_vm3, 0.0, %v1026_v13 }
 0x577   :  { %v1007_v22 = vmax.f32 %v4261_v17, 0.0  ;;  %1064 = vrot.lane.b32.xlu1 %v1008_v56, %s3769_s8  ;;  %v1031_v23 = vrot.slane %v1008_v56, 7  ;;  %v1047_v25 = vrot.slane %v1008_v56, 1  ;;  %v1038_v36 = vsel %vm4010_vm6, 0.0, %v1037_v35 }
 0x578   :  { %1074 = vrot.lane.b32.xlu0 %v1044_v20, %s3771_s29 }
 0x579   :  { %v1029_v24 = vrot.slane %v1007_v22, 7  ;;  %v1045_v1 = vrot.slane %v1007_v22, 1  ;;  %v1053_v30 = vsel %vm327_vm2, %v1047_v25, 0.0 }
 0x57a   :  { %v1057_v32 = vsel %vm3999_vm5, 0.0, %v1053_v30 }
 0x57b   :  { %v1046_v26 = vsel %vm327_vm2, %v1043_v16, %v1045_v1  ;;  %v1032_v27 = vsel %vm298_vm3, %v1029_v24, %v1031_v23  ;;  %v1030_v28 = vsel %vm298_vm3, %v1027_v12, %v1029_v24  ;;  %v1048_v31 = vsel %vm327_vm2, %v1045_v1, %v1047_v25 }
 0x57c   :  { %1062 = vrot.lane.b32.xlu0 %v1007_v22, %s3769_s8  ;;  %v1055_v29 = vsel %vm3981_vm4, 0.0, %v1046_v26  ;;  %v1040_v45 = vsel %vm4020_vm11, 0.0, %v1030_v28 }
 0x57d   :  { %1076 = vrot.lane.b32.xlu1 %v1055_v29, %s3771_s29 }
 0x580   :  { %1078 = vrot.lane.b32.xlu0 %v1048_v31, %s3771_s29 }
 0x581   :  { %1080 = vrot.lane.b32.xlu1 %v1057_v32, %s3771_s29 }
 0x5e4   :  { %v1061_v33 = vpop.permute.xlu1 %1060 }
 0x5e5   :  { %v1087_v42 = vsel %vm397_vm9, %v1028_v59, %v1061_v33 }
 0x5e6   :  { %v1059_v34 = vpop.permute.xlu0 %1058 }
 0x5e7   :  { %v1086_v37 = vsel %vm397_vm9, %v1038_v36, %v1059_v34 }
 0x5e9   :  { %v1065_v39 = vpop.permute.xlu1 %1064 }
 0x5ea   :  { %v1075_v38 = vpop.permute.xlu0 %1074  ;;  %v1089_v48 = vsel %vm397_vm9, %v1032_v27, %v1065_v39 }
 0x5eb   :  { %v1090_v40 = vsel %vm422_vm10, %v1086_v37, %v1075_v38  ;;  %v1438_v37 = vmul.f32 %v1412_v10, %v1412_v10 }
 0x5ec   :  { %3471 = vmatprep.mubr.msk.f32.mxu0 %vm615_vm12, %v1090_v40 }
 0x5ed   :  { %v1440_v39 = vsel %vm422_vm10, %v1438_v37, 0.0  ;;  %v1420_v37 = vld [vmem:[%s4891_s12 + $0x38] sm:$0xff] }
 0x5ee   :  { %v1063_v41 = vpop.permute.xlu0 %1062  ;;  %3511 = vmatprep.subr.mxu0 %v1420_v37 }
 0x5ef   :  { %v1077_v43 = vpop.permute.xlu1 %1076  ;;  %v1088_v46 = vsel %vm397_vm9, %v1040_v45, %v1063_v41 }
 0x5f0   :  { %v1091_v44 = vsel %vm422_vm10, %v1087_v42, %v1077_v43 }
 0x5f1   :  { %3472 = vmatmul.mubr.msk.f32.vlgmr.msra.gmra.mxu0 %vm615_vm12, %v1091_v44 }
 0x5f2   :  { %v1079_v47 = vpop.permute.xlu0 %1078  ;;  %3512 = vmatpush3.msra.mxu0 %v1420_v37 }
 0x5f3   :  { %v1092_v49 = vsel %vm422_vm10, %v1088_v46, %v1079_v47  ;;  %v1081_v50 = vpop.permute.xlu1 %1080 }
 0x5f4   :  { %v1093_v52 = vsel %vm422_vm10, %v1089_v48, %v1081_v50  ;;  %3474 = vmatprep.mubr.msk.f32.mxu0 %vm615_vm12, %v1092_v49 }
 0x5f5   :  { %3475 = vmatmul.mubr.msk.f32.gmra.mxu0 %vm615_vm12, %v1093_v52 }
 0x6b1   :  { %v3473_v57 = vpop.f32.mrf.mxu0 }
 0x6b2   :  { %v1192_v61 = vmax.f32 %v3473_v57, 0.0 }
 0x6b3   :  { %v1172_v58 = vpop.f32.mrf.mxu0 }
 0x6b4   :  { %v1191_v60 = vmax.f32 %v1172_v58, 0.0 }
 0x6b5   :  { %v3476_v62 = vpop.f32.mrf.mxu0 }
 0x6b6   :  { %3481 = vmatprep.mubr.msk.f32.mxu1 %vm392_vm7, %v1191_v60  ;;  %v1194_v3 = vmax.f32 %v3476_v62, 0.0 }
 0x6b7   :  { %v1182_v63 = vpop.f32.mrf.mxu0  ;;  %3482 = vmatmul.mubr.msk.f32.vlgmr.msra.gmra.mxu1 %vm392_vm7, %v1192_v61 }
 0x6b8   :  { %v1193_v2 = vmax.f32 %v1182_v63, 0.0  ;;  %3488 = vmatpush3.msra.mxu1 %v1306_v55 }
 0x6b9   :  { %3489 = vmatprep.subr.mxu1 %v1305_v5 }
 0x6ba   :  { %3484 = vmatprep.mubr.msk.f32.mxu1 %vm392_vm7, %v1193_v2  ;;  %3490 = vmatpush3.msra.mxu1 %v1305_v5 }
 0x6bb   :  { %3485 = vmatmul.mubr.msk.f32.gmra.mxu1 %vm392_vm7, %v1194_v3  ;;  %3491 = vmatprep.subr.mxu1 %v1304_v6 }
 0x6bc   :  { %3492 = vmatpush3.msra.mxu1 %v1304_v6 }
 0x6bd   :  { %3493 = vmatprep.subr.mxu1 %v1303_v7 }
 0x6be   :  { %3494 = vmatpush3.msra.mxu1 %v1303_v7 }
 0x6bf   :  { %3501 = vmatprep.subr.mxu1 %v1412_v10 }
 0x777   :  { %v3483_v53 = vpop.f32.mrf.mxu1 }
 0x778   :  { %v1296_v12 = vadd.f32 %v3483_v53, %v4244_v4  ;;  %v1411_v4 = vld [vmem:[%s4890_s11] sm:$0xff] }
 0x779   :  { %v1276_v13 = vpop.f32.mrf.mxu1  ;;  %v1437_v38 = vmul.f32 %v1411_v4, %v1411_v4 }
 0x77a   :  { %v1295_v14 = vadd.f32 %v1276_v13, %v4251_v8  ;;  %v1300_v56 = vmax.f32 %v1296_v12, 0.0  ;;  %v3090_v8 = vld [vmem:[%s4889_s10] ss:$0 sm:$0xff] }
 0x77b   :  { %v3486_v15 = vpop.f32.mrf.mxu1  ;;  %v1439_v40 = vsel %vm422_vm10, %v1437_v38, 0.0  ;;  %v1419_v38 = vld [vmem:[%s4891_s12 + $0x30] sm:$0xff] }
 0x77c   :  { %v1299_v16 = vmax.f32 %v1295_v14, 0.0  ;;  %v1298_v18 = vadd.f32 %v3486_v15, %v4256_v11  ;;  %v1441_v41 = vadd.f32 %v1440_v39, %v1439_v40  ;;  %v1418_v39 = vld [vmem:[%s4891_s12 + $0x28] sm:$0xff]  ;;  %3513 = vmatprep.subr.mxu0 %v1419_v38  ;;  %v1417_v40 = vld [vmem:[%s4891_s12 + $0x20] sm:$0xff] }
 0x77d   :  { %v1286_v20 = vpop.f32.mrf.mxu1  ;;  %3514 = vmatpush3.msra.mxu0 %v1419_v38  ;;  %v1829_v38 = vld [vmem:[%s4892_s13 + $0x20] sm:$0xff] }
 0x77e   :  { %v1297_v59 = vadd.f32 %v1286_v20, %v4261_v17  ;;  %3495 = vmatprep.mubr.msk.f32.mxu1 %vm397_vm9, %v1299_v16  ;;  %v1302_v23 = vmax.f32 %v1298_v18, 0.0  ;;  %v1442_v42 = vrot.slane %v1441_v41, 4  ;;  %3515 = vmatprep.subr.mxu0 %v1418_v39 }
 0x77f   :  { %3496 = vmatmul.mubr.msk.f32.vlgmr.msra.gmra.mxu1 %vm397_vm9, %v1300_v56  ;;  %v4372_v56 = vand.u32 127, %v75_v19  ;;  %3516 = vmatpush3.msra.mxu0 %v1418_v39  ;;  %v1828_v39 = vld [vmem:[%s4892_s13 + $0x18] sm:$0xff] }
 0x780   :  { %v1301_v22 = vmax.f32 %v1297_v59, 0.0  ;;  %3502 = vmatpush3.msra.mxu1 %v1412_v10  ;;  %v1443_v43 = vadd.f32 %v1442_v42, %v1441_v41  ;;  %3517 = vmatprep.subr.mxu0 %v1417_v40 }
 0x781   :  { %3503 = vmatprep.subr.mxu1 %v1411_v4  ;;  %3518 = vmatpush3.msra.mxu0 %v1417_v40  ;;  %v1827_v40 = vld [vmem:[%s4892_s13 + $0x10] sm:$0xff] }
 0x782   :  { %3498 = vmatprep.mubr.msk.f32.mxu1 %vm397_vm9, %v1301_v22  ;;  %3504 = vmatpush3.msra.mxu1 %v1411_v4  ;;  %v1444_v44 = vrot.slane %v1443_v43, 2 }
 0x783   :  { %3499 = vmatmul.mubr.msk.f32.gmra.mxu1 %vm397_vm9, %v1302_v23 }
 0x784   :  { %v1445_v45 = vadd.f32 %v1444_v44, %v1443_v43 }
 0x786   :  { %v1446_v47 = vrot.slane %v1445_v45, 1 }
 0x788   :  { %v1447_v49 = vadd.f32 %v1446_v47, %v1445_v45 }
 0x83f   :  { %v3497_v11 = vpop.f32.mrf.mxu1 }
 0x840   :  { %v4337_v17 = vadd.f32 %v3497_v11, %v3090_v8 }
 0x841   :  { %v1392_v24 = vpop.f32.mrf.mxu1 }
 0x842   :  { %v4339_v1 = vadd.f32 %v3090_v8, %v1392_v24  ;;  %v1422_v25 = vmul.f32 %v4337_v17, %v4337_v17 }
 0x843   :  { %v3500_v26 = vpop.f32.mrf.mxu1 }
 0x844   :  { %3505 = vmatprep.mubr.msk.f32.mxu1 %vm392_vm7, %v4339_v1  ;;  %v1428_v27 = vsel %vm392_vm7, %v1422_v25, 0.0  ;;  %v1421_v28 = vmul.f32 %v4339_v1, %v4339_v1  ;;  %v4350_v30 = vadd.f32 %v3500_v26, %v3090_v8 }
 0x845   :  { %1429 = vadd.xlane.f32.xlu1 %v1428_v27  ;;  %v1402_v29 = vpop.f32.mrf.mxu1  ;;  %3506 = vmatmul.mubr.msk.f32.vlgmr.msra.gmra.mxu1 %vm392_vm7, %v4337_v17 }
 0x846   :  { %v4352_v31 = vadd.f32 %v3090_v8, %v1402_v29  ;;  %v1425_v32 = vsel %vm392_vm7, %v1421_v28, 0.0  ;;  %v1424_v35 = vmul.f32 %v4350_v30, %v4350_v30 }
 0x847   :  { %1426 = vadd.xlane.f32.xlu0 %v1425_v32 }
 0x848   :  { %3508 = vmatprep.mubr.msk.f32.mxu1 %vm392_vm7, %v4352_v31  ;;  %v1423_v33 = vmul.f32 %v4352_v31, %v4352_v31  ;;  %v1434_v36 = vsel %vm392_vm7, %v1424_v35, 0.0 }
 0x849   :  { %3509 = vmatmul.mubr.msk.f32.gmra.mxu1 %vm392_vm7, %v4350_v30 }
 0x84a   :  { %v1431_v34 = vsel %vm392_vm7, %v1423_v33, 0.0 }
 0x84b   :  { %1432 = vadd.xlane.f32.xlu0 %v1431_v34 }
 0x84f   :  { %1435 = vadd.xlane.f32.xlu0 %v1434_v36 }
 0x8ce   :  { %v1430_v50 = vpop.xlane.xlu1 %1429 }
 0x8cf   :  { %v1449_v54 = vadd.f32 %v1447_v49, %v1430_v50 }
 0x8d0   :  { %v1427_v46 = vpop.xlane.xlu0 %1426 }
 0x8d1   :  { %v1448_v60 = vadd.f32 %v1447_v49, %v1427_v46 }
 0x8d4   :  { %v1433_v48 = vpop.xlane.xlu0 %1432 }
 0x8d5   :  { %v1450_v10 = vadd.f32 %v1447_v49, %v1433_v48 }
 0x8d8   :  { %v1436_v57 = vpop.xlane.xlu0 %1435 }
 0x8d9   :  { %v1451_v2 = vadd.f32 %v1447_v49, %v1436_v57 }
 0x905   :  { %v3507_v52 = vpop.f32.mrf.mxu1 }
 0x906   :  { %v1550_v55 = vmul.f32 2.0, %v3507_v52 }
 0x907   :  { %v1530_v58 = vpop.f32.mrf.mxu1 }
 0x908   :  { %v1549_v61 = vmul.f32 2.0, %v1530_v58  ;;  %v1554_v62 = vsub.f32 %v1449_v54, %v1550_v55 }
 0x909   :  { %v3510_v63 = vpop.f32.mrf.mxu1 }
 0x90a   :  { %v1552_v3 = vmul.f32 2.0, %v3510_v63  ;;  %v1560_v5 = vsel %vm422_vm10, %v1554_v62, inf  ;;  %v1553_v6 = vsub.f32 %v1448_v60, %v1549_v61  ;;  %v1416_v61 = vld [vmem:[%s4891_s12 + $0x18] sm:$0xff]  ;;  %v1414_v63 = vld [vmem:[%s4891_s12 + $0x8] sm:$0xff] }
 0x90b   :  { %v1540_v7 = vpop.f32.mrf.mxu1  ;;  %1561 = vmin.xlane.f32.xlu0 %v1560_v5  ;;  %3519 = vmatprep.subr.mxu0 %v1416_v61 }
 0x90c   :  { %v1551_v53 = vmul.f32 2.0, %v1540_v7  ;;  %v1557_v12 = vsel %vm422_vm10, %v1553_v6, inf  ;;  %v1556_v13 = vsub.f32 %v1451_v2, %v1552_v3  ;;  %3520 = vmatpush3.msra.mxu0 %v1416_v61  ;;  %v1413_v2 = vld [vmem:[%s4891_s12] sm:$0xff] }
 0x90d   :  { %1558 = vmin.xlane.f32.xlu1 %v1557_v12 }
 0x90e   :  { %v1566_v14 = vsel %vm422_vm10, %v1556_v13, inf  ;;  %v1555_v15 = vsub.f32 %v1450_v10, %v1551_v53 }
 0x90f   :  { %1567 = vmin.xlane.f32.xlu0 %v1566_v14 }
 0x910   :  { %v1563_v16 = vsel %vm422_vm10, %v1555_v15, inf }
 0x911   :  { %1564 = vmin.xlane.f32.xlu1 %v1563_v16 }
 0x994   :  { %v1562_v18 = vpop.xlane.xlu0 %1561 }
 0x995   :  { %vm1572_vm13 = vcmp.le.f32.partialorder %v1554_v62, %v1562_v18  ;;  %v1415_v62 = vld [vmem:[%s4891_s12 + $0x10] sm:$0xff] }
 0x996   :  { %v1576_v20 = vsel %vm1572_vm13, %v4372_v56, 64  ;;  %v1559_v59 = vpop.xlane.xlu1 %1558  ;;  %3521 = vmatprep.subr.mxu0 %v1415_v62 }
 0x997   :  { %v1594_v22 = vsel %vm422_vm10, %v1576_v20, 2147483647  ;;  %vm1571_vm14 = vcmp.le.f32.partialorder %v1553_v6, %v1559_v59  ;;  %3522 = vmatpush3.msra.mxu0 %v1415_v62 }
 0x998   :  { %v1575_v23 = vsel %vm1571_vm14, %v4372_v56, 64  ;;  %v1568_v4 = vpop.xlane.xlu0 %1567  ;;  %v1596_v8 = vshra.s32 %v1594_v22, 16  ;;  %v1595_v41 = vand.u32 65535, %v1594_v22  ;;  %3523 = vmatprep.subr.mxu0 %v1414_v63 }
 0x999   :  { %v1579_v11 = vsel %vm422_vm10, %v1575_v23, 2147483647  ;;  %vm1574_vm15 = vcmp.le.f32.partialorder %v1556_v13, %v1568_v4  ;;  %3524 = vmatpush3.msra.mxu0 %v1414_v63  ;;  %v3772_v23 = vmov 0.0  }
 0x99a   :  { %v1578_v24 = vsel %vm1574_vm15, %v4372_v56, 64  ;;  %v1565_v25 = vpop.xlane.xlu1 %1564  ;;  %v1598_v19 = vcvt.s32.f32 %v1596_v8  ;;  %v1581_v26 = vshra.s32 %v1579_v11, 16  ;;  %v1580_v42 = vand.u32 65535, %v1579_v11  ;;  %3525 = vmatprep.subr.mxu0 %v1413_v2 }
 0x99b   :  { %v1624_v27 = vsel %vm422_vm10, %v1578_v24, 2147483647  ;;  %vm1573_vm0 = vcmp.le.f32.partialorder %v1555_v15, %v1565_v25  ;;  %v1597_v44 = vcvt.s32.f32 %v1595_v41  ;;  %3526 = vmatpush3.msra.mxu0 %v1413_v2  ;;  %v1826_v41 = vld [vmem:[%s4892_s13 + $0x8] sm:$0xff] }
 0x99c   :  { %v1577_v28 = vsel %vm1573_vm0, %v4372_v56, 64  ;;  %1599 = vmin.xlane.f32.xlu0 %v1598_v19  ;;  %v1583_v29 = vcvt.s32.f32 %v1581_v26  ;;  %v1626_v32 = vshra.s32 %v1624_v27, 16  ;;  %v1625_v45 = vand.u32 65535, %v1624_v27 }
 0x99d   :  { %v1609_v33 = vsel %vm422_vm10, %v1577_v28, 2147483647  ;;  %v1582_v48 = vcvt.s32.f32 %v1580_v42  ;;  %v1825_v42 = vld [vmem:[%s4892_s13] sm:$0xff] }
 0x99e   :  { %1584 = vmin.xlane.f32.xlu1 %v1583_v29  ;;  %v1628_v34 = vcvt.s32.f32 %v1626_v32  ;;  %v1611_v35 = vshra.s32 %v1609_v33, 16  ;;  %v1610_v49 = vand.u32 65535, %v1609_v33  ;;  %v1627_v54 = vcvt.s32.f32 %v1625_v45 }
 0x9a0   :  { %1629 = vmin.xlane.f32.xlu0 %v1628_v34  ;;  %v1613_v36 = vcvt.s32.f32 %v1611_v35  ;;  %v1612_v58 = vcvt.s32.f32 %v1610_v49 }
 0x9a2   :  { %1614 = vmin.xlane.f32.xlu1 %v1613_v36 }
 0xa25   :  { %v1600_v43 = vpop.xlane.xlu0 %1599 }
 0xa26   :  { %vm1601_vm13 = vcmp.eq.f32.partialorder %v1598_v19, %v1600_v43  ;;  %v1606_v3 = vcvt.f32.s32 %v1600_v43 }
 0xa27   :  { %v1585_v46 = vpop.xlane.xlu1 %1584  ;;  %v1602_v47 = vsel %vm1601_vm13, %v1597_v44, inf  ;;  %vm1748_vm13 = vcmask 7168  }
 0xa28   :  { %1603 = vmin.xlane.f32.xlu0 %v1602_v47  ;;  %vm1586_vm14 = vcmp.eq.f32.partialorder %v1583_v29, %v1585_v46  ;;  %v1591_v5 = vcvt.f32.s32 %v1585_v46  ;;  %v1607_v7 = vshll.u32 %v1606_v3, 16 }
 0xa29   :  { %v1630_v50 = vpop.xlane.xlu0 %1629  ;;  %v1587_v52 = vsel %vm1586_vm14, %v1582_v48, inf }
 0xa2a   :  { %1588 = vmin.xlane.f32.xlu1 %v1587_v52  ;;  %vm1631_vm15 = vcmp.eq.f32.partialorder %v1628_v34, %v1630_v50  ;;  %v1636_v10 = vcvt.f32.s32 %v1630_v50  ;;  %v1592_v13 = vshll.u32 %v1591_v5, 16 }
 0xa2b   :  { %v1615_v55 = vpop.xlane.xlu1 %1614  ;;  %v1632_v57 = vsel %vm1631_vm15, %v1627_v54, inf }
 0xa2c   :  { %1633 = vmin.xlane.f32.xlu0 %v1632_v57  ;;  %vm1616_vm0 = vcmp.eq.f32.partialorder %v1613_v36, %v1615_v55  ;;  %v1621_v14 = vcvt.f32.s32 %v1615_v55  ;;  %v1637_v20 = vshll.u32 %v1636_v10, 16 }
 0xa2d   :  { %v1617_v60 = vsel %vm1616_vm0, %v1612_v58, inf }
 0xa2e   :  { %1618 = vmin.xlane.f32.xlu1 %v1617_v60  ;;  %v1622_v11 = vshll.u32 %v1621_v14, 16 }
 0xab1   :  { %v1604_v6 = vpop.xlane.xlu0 %1603 }
 0xab2   :  { %v1605_v53 = vcvt.f32.s32 %v1604_v6 }
 0xab3   :  { %v1589_v12 = vpop.xlane.xlu1 %1588 }
 0xab4   :  { %v1608_v15 = vadd.s32 %v1607_v7, %v1605_v53  ;;  %v1590_v16 = vcvt.f32.s32 %v1589_v12 }
 0xab5   :  { %v1634_v18 = vpop.xlane.xlu0 %1633 }
 0xab6   :  { %vm1640_vm14 = vcmp.eq.s32.totalorder %v4372_v56, %v1608_v15  ;;  %1750 = vst.msk [vmem:[%s4903_s24 + $0x8] sm:$0xff] %vm1748_vm13, %v1608_v15  ;;  %v1593_v59 = vadd.s32 %v1592_v13, %v1590_v16  ;;  %v1635_v22 = vcvt.f32.s32 %v1634_v18 }
 0xab7   :  { %v3100_v4 = vsel %vm1640_vm14, 1.0, %v3772_v23  ;;  %v1619_v8 = vpop.xlane.xlu1 %1618 }
 0xab8   :  { %1754 = vst.msk [vmem:[#allocation6 + $0x8] sm:$0xff] %vm422_vm10, %v3100_v4  ;;  %v1638_v24 = vadd.s32 %v1637_v20, %v1635_v22  ;;  %v1620_v25 = vcvt.f32.s32 %v1619_v8  ;;  %vm1639_vm15 = vcmp.eq.s32.totalorder %v4372_v56, %v1593_v59  ;;  %v1789_v28 = vsel %vm422_vm10, %v3100_v4, 0.0 }
 0xab9   :  { %1749 = vst.msk [vmem:[%s4903_s24] sm:$0xff] %vm1748_vm13, %v1593_v59  ;;  %v3099_v19 = vsel %vm1639_vm15, 1.0, %v3772_v23 }
 0xaba   :  { %1752 = vst.msk [vmem:[%s4903_s24 + $0x18] sm:$0xff] %vm1748_vm13, %v1638_v24  ;;  %v1623_v26 = vadd.s32 %v1622_v11, %v1620_v25  ;;  %3527 = vmatprep.mubr.msk.f32.mxu0 %vm422_vm10, %v3099_v19  ;;  %v1788_v27 = vsel %vm422_vm10, %v3099_v19, 0.0  ;;  %vm1642_vm0 = vcmp.eq.s32.totalorder %v4372_v56, %v1638_v24 }
 0xabb   :  { %1753 = vst.msk [vmem:[#allocation6] sm:$0xff] %vm422_vm10, %v3099_v19  ;;  %v1790_v29 = vadd.f32 %v1789_v28, %v1788_v27  ;;  %3528 = vmatmul.mubr.msk.f32.vlgmr.msra.gmra.mxu0 %vm422_vm10, %v3100_v4  ;;  %v3102_v32 = vsel %vm1642_vm0, 1.0, %v3772_v23 }
 0xabc   :  { %1751 = vst.msk [vmem:[%s4903_s24 + $0x10] sm:$0xff] %vm1748_vm13, %v1623_v26  ;;  %vm1641_vm14 = vcmp.eq.s32.totalorder %v4372_v56, %v1623_v26  ;;  %v1793_v36 = vsel %vm422_vm10, %v3102_v32, 0.0  ;;  %v1830_v56 = vld [vmem:[%s4892_s13 + $0x28] sm:$0xff] }
 0xabd   :  { %1756 = vst.msk [vmem:[#allocation6 + $0x18] sm:$0xff] %vm422_vm10, %v3102_v32  ;;  %v3101_v33 = vsel %vm1641_vm14, 1.0, %v3772_v23  ;;  %3533 = vmatprep.subr.mxu1 %v1830_v56 }
 0xabe   :  { %3530 = vmatprep.mubr.msk.f32.mxu0 %vm422_vm10, %v3101_v33  ;;  %1755 = vst.msk [vmem:[#allocation6 + $0x10] sm:$0xff] %vm422_vm10, %v3101_v33  ;;  %v1791_v34 = vsel %vm422_vm10, %v3101_v33, 0.0  ;;  %3534 = vmatpush3.msra.mxu1 %v1830_v56 }
 0xabf   :  { %v1792_v35 = vadd.f32 %v1791_v34, %v1790_v29  ;;  %3531 = vmatmul.mubr.msk.f32.gmra.mxu0 %vm422_vm10, %v3102_v32  ;;  %3535 = vmatprep.subr.mxu1 %v1829_v38 }
 0xac0   :  { %3536 = vmatpush3.msra.mxu1 %v1829_v38 }
 0xac1   :  { %v4438_v37 = vadd.f32 %v1793_v36, %v1792_v35  ;;  %3537 = vmatprep.subr.mxu1 %v1828_v39 }
 0xac2   :  { %3538 = vmatpush3.msra.mxu1 %v1828_v39  ;;  %v2022_v39 = vld [vmem:[%s4894_s15 + $0x58] sm:$0xff] }
 0xac3   :  { %3539 = vmatprep.subr.mxu1 %v1827_v40  ;;  %3551 = vmatprep.subr.mxu0 %v2022_v39 }
 0xac4   :  { %3540 = vmatpush3.msra.mxu1 %v1827_v40  ;;  %v2021_v40 = vld [vmem:[%s4894_s15 + $0x50] sm:$0xff]  ;;  %3552 = vmatpush3.msra.mxu0 %v2022_v39 }
 0xac5   :  { %3541 = vmatprep.subr.mxu1 %v1826_v41  ;;  %3553 = vmatprep.subr.mxu0 %v2021_v40 }
 0xac6   :  { %3542 = vmatpush3.msra.mxu1 %v1826_v41  ;;  %v2020_v41 = vld [vmem:[%s4894_s15 + $0x48] sm:$0xff]  ;;  %3554 = vmatpush3.msra.mxu0 %v2021_v40 }
 0xac7   :  { %3543 = vmatprep.subr.mxu1 %v1825_v42  ;;  %3555 = vmatprep.subr.mxu0 %v2020_v41 }
 0xac8   :  { %3544 = vmatpush3.msra.mxu1 %v1825_v42  ;;  %v2019_v42 = vld [vmem:[%s4894_s15 + $0x40] sm:$0xff]  ;;  %3556 = vmatpush3.msra.mxu0 %v2020_v41 }
 0xac9   :  { %3557 = vmatprep.subr.mxu0 %v2019_v42 }
 0xaca   :  { %3558 = vmatpush3.msra.mxu0 %v2019_v42 }
 0xb7b   :  { %v3529_v43 = vpop.f32.mrf.mxu0 }
 0xb7c   :  { %v1758_v44 = vsub.f32 %v3529_v43, %v4337_v17  ;;  %1870 = vrot.lane.b32.xlu0 %v3529_v43, %s3768_s4  ;;  %v1837_v48 = vrot.slane %v3529_v43, 7 }
 0xb7d   :  { %v1729_v45 = vpop.f32.mrf.mxu0 }
 0xb7e   :  { %v1757_v46 = vsub.f32 %v1729_v45, %v4339_v1  ;;  %v1836_v47 = vrot.slane %v1729_v45, 7  ;;  %1868 = vrot.lane.b32.xlu1 %v1729_v45, %s3768_s4  ;;  %v1762_v50 = vmul.f32 %v1758_v44, %v1758_v44  ;;  %v1852_v54 = vrot.slane %v1729_v45, 1  ;;  %v2017_v44 = vld [vmem:[%s4894_s15 + $0x30] sm:$0xff]  ;;  %v2016_v45 = vld [vmem:[%s4894_s15 + $0x28] sm:$0xff] }
 0xb7f   :  { %v3532_v49 = vpop.f32.mrf.mxu0  ;;  %v1853_v1 = vrot.slane %v3529_v43, 1  ;;  %v2018_v43 = vld [vmem:[%s4894_s15 + $0x38] sm:$0xff] }
 0xb80   :  { %v1761_v52 = vmul.f32 %v1757_v46, %v1757_v46  ;;  %v1838_v57 = vsel %vm298_vm3, %v1836_v47, %v1837_v48  ;;  %v1760_v17 = vsub.f32 %v3532_v49, %v4350_v30  ;;  %v1857_v58 = vrot.slane %v3532_v49, 1  ;;  %3559 = vmatprep.subr.mxu0 %v2018_v43  ;;  %v2015_v46 = vld [vmem:[%s4894_s15 + $0x20] sm:$0xff] }
 0xb81   :  { %v1739_v55 = vpop.f32.mrf.mxu0  ;;  %v1766_v5 = vsel %vm392_vm7, %v1762_v50, 0.0  ;;  %v1854_v6 = vsel %vm327_vm2, %v1852_v54, %v1853_v1  ;;  %v1847_v20 = vsel %vm298_vm3, 0.0, %v1836_v47  ;;  %v1841_v29 = vrot.slane %v3532_v49, 7  ;;  %3560 = vmatpush3.msra.mxu0 %v2018_v43  ;;  %v2014_v47 = vld [vmem:[%s4894_s15 + $0x18] sm:$0xff]  ;;  %v2012_v50 = vld [vmem:[%s4894_s15 + $0x8] sm:$0xff]  ;;  %v2196_v43 = vld [vmem:[%s4895_s16] sm:$0xff] }
 0xb82   :  { %v1759_v60 = vsub.f32 %v1739_v55, %v4352_v31  ;;  %v1855_v61 = vrot.slane %v1739_v55, 1  ;;  %1874 = vrot.lane.b32.xlu1 %v3532_v49, %s3768_s4  ;;  %1872 = vrot.lane.b32.xlu0 %v1739_v55, %s3768_s4  ;;  %v1765_v62 = vsel %vm392_vm7, %v1761_v52, 0.0  ;;  %v1764_v3 = vmul.f32 %v1760_v17, %v1760_v17  ;;  %v3107_v49 = vld [vmem:[%s4893_s14] ss:$0 sm:$0xff] }
 0xb83   :  { %v1767_v30 = vadd.f32 %v1766_v5, %v1765_v62  ;;  %v1863_v14 = vsel %vm327_vm2, %v1857_v58, 0.0  ;;  %v1839_v22 = vrot.slane %v1739_v55, 7  ;;  %v1848_v4 = vsel %vm4010_vm6, 0.0, %v1847_v20  ;;  %3561 = vmatprep.subr.mxu0 %v2017_v44  ;;  %v2011_v52 = vld [vmem:[%s4894_s15] sm:$0xff] }
 0xb84   :  { %v1763_v63 = vmul.f32 %v1759_v60, %v1759_v60  ;;  %v1858_v2 = vsel %vm327_vm2, %v1855_v61, %v1857_v58  ;;  %v1856_v31 = vsel %vm327_vm2, %v1853_v1, %v1855_v61  ;;  %v1770_v53 = vsel %vm392_vm7, %v1764_v3, 0.0  ;;  %3562 = vmatpush3.msra.mxu0 %v2017_v44 }
 0xb85   :  { %v1865_v12 = vsel %vm3981_vm4, 0.0, %v1856_v31  ;;  %v1867_v15 = vsel %vm3999_vm5, 0.0, %v1863_v14  ;;  %v1840_v24 = vsel %vm298_vm3, %v1837_v48, %v1839_v22  ;;  %v1842_v35 = vsel %vm298_vm3, %v1839_v22, %v1841_v29  ;;  %3563 = vmatprep.subr.mxu0 %v2016_v45  ;;  %v2013_v48 = vld [vmem:[%s4894_s15 + $0x10] sm:$0xff]  ;;  %v2197_v31 = vld [vmem:[%s4895_s16 + $0x8] sm:$0xff] }
 0xb86   :  { %1884 = vrot.lane.b32.xlu1 %v1854_v6, %s3769_s8  ;;  %1888 = vrot.lane.b32.xlu0 %v1858_v2, %s3769_s8  ;;  %v1768_v7 = vsel %vm392_vm7, %v1763_v63, 0.0  ;;  %v1850_v27 = vsel %vm4020_vm11, 0.0, %v1840_v24 }
 0xb87   :  { %v1769_v10 = vadd.f32 %v1768_v7, %v1767_v30  ;;  %3564 = vmatpush3.msra.mxu0 %v2016_v45  ;;  %3581 = vmatprep.subr.mxu1 %v2197_v31 }
 0xb88   :  { %3565 = vmatprep.subr.mxu0 %v2015_v46 }
 0xb89   :  { %v4478_v13 = vadd.f32 %v1770_v53, %v1769_v10  ;;  %3566 = vmatpush3.msra.mxu0 %v2015_v46 }
 0xb8a   :  { %1886 = vrot.lane.b32.xlu1 %v1865_v12, %s3769_s8  ;;  %3567 = vmatprep.subr.mxu0 %v2014_v47 }
 0xb8b   :  { %3568 = vmatpush3.msra.mxu0 %v2014_v47 }
 0xb8c   :  { %3569 = vmatprep.subr.mxu0 %v2013_v48 }
 0xb8d   :  { %3570 = vmatpush3.msra.mxu0 %v2013_v48 }
 0xb8e   :  { %1890 = vrot.lane.b32.xlu1 %v1867_v15, %s3769_s8  ;;  %3571 = vmatprep.subr.mxu0 %v2012_v50 }
 0xb8f   :  { %3572 = vmatpush3.msra.mxu0 %v2012_v50 }
 0xb90   :  { %3573 = vmatprep.subr.mxu0 %v2011_v52 }
 0xb91   :  { %3574 = vmatpush3.msra.mxu0 %v2011_v52 }
 0xbee   :  { %v1871_v18 = vpop.permute.xlu0 %1870 }
 0xbef   :  { %v1897_v26 = vsel %vm392_vm7, %v1838_v57, %v1871_v18 }
 0xbf0   :  { %v1869_v16 = vpop.permute.xlu1 %1868 }
 0xbf1   :  { %v1896_v8 = vsel %vm392_vm7, %v1848_v4, %v1869_v16 }
 0xbf4   :  { %v1875_v59 = vpop.permute.xlu1 %1874  ;;  %v1873_v23 = vpop.permute.xlu0 %1872 }
 0xbf5   :  { %v1898_v32 = vsel %vm392_vm7, %v1850_v27, %v1873_v23  ;;  %v1899_v36 = vsel %vm392_vm7, %v1842_v35, %v1875_v59 }
 0xbf8   :  { %v1885_v11 = vpop.permute.xlu1 %1884  ;;  %v1889_v19 = vpop.permute.xlu0 %1888 }
 0xbf9   :  { %v1900_v25 = vsel %vm397_vm9, %v1896_v8, %v1885_v11  ;;  %v1902_v34 = vsel %vm397_vm9, %v1898_v32, %v1889_v19 }
 0xbfa   :  { %3545 = vmatprep.mubr.msk.f32.mxu1 %vm402_vm8, %v1900_v25 }
 0xbfc   :  { %v1887_v28 = vpop.permute.xlu1 %1886 }
 0xbfd   :  { %v1901_v33 = vsel %vm397_vm9, %v1897_v26, %v1887_v28 }
 0xbfe   :  { %3546 = vmatmul.mubr.msk.f32.vlgmr.msra.gmra.mxu1 %vm402_vm8, %v1901_v33 }
 0xbff   :  { %3548 = vmatprep.mubr.msk.f32.mxu1 %vm402_vm8, %v1902_v34  ;;  %3582 = vmatpush3.msra.mxu1 %v2197_v31 }
 0xc00   :  { %v1891_v56 = vpop.permute.xlu1 %1890  ;;  %3583 = vmatprep.subr.mxu1 %v2196_v43 }
 0xc01   :  { %v1903_v38 = vsel %vm397_vm9, %v1899_v36, %v1891_v56  ;;  %3584 = vmatpush3.msra.mxu1 %v2196_v43 }
 0xc02   :  { %3549 = vmatmul.mubr.msk.f32.gmra.mxu1 %vm402_vm8, %v1903_v38 }
 0xcbe   :  { %v3547_v54 = vpop.f32.mrf.mxu1 }
 0xcbf   :  { %v4543_v55 = vadd.f32 %v3547_v54, %v3107_v49  ;;  %v3131_v54 = vld [vmem:[%s4894_s15 + $0xb8] sm:$0xff] }
 0xcc0   :  { %v1988_v57 = vpop.f32.mrf.mxu1  ;;  %3591 = vmatprep.subr.mxu1 %v3131_v54 }
 0xcc1   :  { %v2008_v17 = vmax.f32 %v4543_v55, 0.0  ;;  %v4546_v58 = vadd.f32 %v3107_v49, %v1988_v57  ;;  %v3130_v57 = vld [vmem:[%s4894_s15 + $0xb0] sm:$0xff] }
 0xcc2   :  { %v3550_v60 = vpop.f32.mrf.mxu1 }
 0xcc3   :  { %v2007_v61 = vmax.f32 %v4546_v58, 0.0  ;;  %v4549_v1 = vadd.f32 %v3550_v60, %v3107_v49  ;;  %2061 = vrot.lane.b32.xlu1 %v2008_v17, %s3769_s8  ;;  %v2044_v63 = vrot.slane %v2008_v17, 1  ;;  %v2028_v30 = vrot.slane %v2008_v17, 7  ;;  %v3129_v17 = vld [vmem:[%s4894_s15 + $0xa8] sm:$0xff]  ;;  %v3128_v60 = vld [vmem:[%s4894_s15 + $0xa0] sm:$0xff] }
 0xcc4   :  { %v1998_v62 = vpop.f32.mrf.mxu1 }
 0xcc5   :  { %v2027_v2 = vrot.slane %v2007_v61, 7  ;;  %v2010_v3 = vmax.f32 %v4549_v1, 0.0  ;;  %v4553_v5 = vadd.f32 %v3107_v49, %v1998_v62  ;;  %2059 = vrot.lane.b32.xlu0 %v2007_v61, %s3769_s8  ;;  %v2043_v6 = vrot.slane %v2007_v61, 1  ;;  %v3127_v61 = vld [vmem:[%s4894_s15 + $0x98] sm:$0xff]  ;;  %v3126_v62 = vld [vmem:[%s4894_s15 + $0x90] sm:$0xff] }
 0xcc7   :  { %v2009_v7 = vmax.f32 %v4553_v5, 0.0  ;;  %2065 = vrot.lane.b32.xlu1 %v2010_v3, %s3769_s8  ;;  %v2045_v10 = vsel %vm327_vm2, %v2043_v6, %v2044_v63  ;;  %v2029_v53 = vsel %vm298_vm3, %v2027_v2, %v2028_v30  ;;  %v2032_v12 = vrot.slane %v2010_v3, 7  ;;  %v3122_v6 = vld [vmem:[%s4894_s15 + $0x70] sm:$0xff] }
 0xcc8   :  { %v2048_v16 = vrot.slane %v2010_v3, 1  ;;  %v2038_v24 = vsel %vm298_vm3, 0.0, %v2027_v2  ;;  %v3124_v2 = vld [vmem:[%s4894_s15 + $0x80] sm:$0xff]  ;;  %v3123_v3 = vld [vmem:[%s4894_s15 + $0x78] sm:$0xff] }
 0xcc9   :  { %v2030_v14 = vrot.slane %v2009_v7, 7  ;;  %v2046_v15 = vrot.slane %v2009_v7, 1  ;;  %2075 = vrot.lane.b32.xlu0 %v2045_v10, %s3771_s29  ;;  %v2039_v19 = vsel %vm4010_vm6, 0.0, %v2038_v24 }
 0xcca   :  { %v2054_v23 = vsel %vm327_vm2, %v2048_v16, 0.0 }
 0xccb   :  { %v2047_v18 = vsel %vm327_vm2, %v2044_v63, %v2046_v15  ;;  %v2033_v20 = vsel %vm298_vm3, %v2030_v14, %v2032_v12  ;;  %v2031_v59 = vsel %vm298_vm3, %v2028_v30, %v2030_v14  ;;  %v2049_v4 = vsel %vm327_vm2, %v2046_v15, %v2048_v16  ;;  %v3125_v63 = vld [vmem:[%s4894_s15 + $0x88] sm:$0xff] }
 0xccc   :  { %v2056_v22 = vsel %vm3981_vm4, 0.0, %v2047_v18  ;;  %v2058_v8 = vsel %vm3999_vm5, 0.0, %v2054_v23  ;;  %v2041_v36 = vsel %vm4020_vm11, 0.0, %v2031_v59  ;;  %v3121_v30 = vld [vmem:[%s4894_s15 + $0x68] sm:$0xff] }
 0xccd   :  { %2063 = vrot.lane.b32.xlu0 %v2009_v7, %s3769_s8  ;;  %2077 = vrot.lane.b32.xlu1 %v2056_v22, %s3771_s29 }
 0xcd1   :  { %2079 = vrot.lane.b32.xlu0 %v2049_v4, %s3771_s29  ;;  %2081 = vrot.lane.b32.xlu1 %v2058_v8, %s3771_s29  ;;  %v3137_v8 = vld [vmem:[%s4895_s16 + $0x18] sm:$0xff] }
 0xcd2   :  { %3621 = vmatprep.subr.mxu0 %v3137_v8 }
 0xd35   :  { %v2062_v11 = vpop.permute.xlu1 %2061 }
 0xd36   :  { %v2088_v32 = vsel %vm397_vm9, %v2029_v53, %v2062_v11  ;;  %v3120_v53 = vld [vmem:[%s4894_s15 + $0x60] sm:$0xff]  ;;  %s3773_s15 = smov 112  }
 0xd37   :  { %v2060_v25 = vpop.permute.xlu0 %2059 }
 0xd38   :  { %v2087_v26 = vsel %vm397_vm9, %v2039_v19, %v2060_v25 }
 0xd39   :  { %v2066_v27 = vpop.permute.xlu1 %2065 }
 0xd3a   :  { %v2090_v56 = vsel %vm397_vm9, %v2033_v20, %v2066_v27 }
 0xd3b   :  { %v2076_v28 = vpop.permute.xlu0 %2075 }
 0xd3c   :  { %v2091_v29 = vsel %vm422_vm10, %v2087_v26, %v2076_v28 }
 0xd3d   :  { %3575 = vmatprep.mubr.msk.f32.mxu0 %vm615_vm12, %v2091_v29 }
 0xd3f   :  { %v2078_v33 = vpop.permute.xlu1 %2077  ;;  %v2064_v34 = vpop.permute.xlu0 %2063 }
 0xd40   :  { %v2092_v35 = vsel %vm422_vm10, %v2088_v32, %v2078_v33  ;;  %v2089_v38 = vsel %vm397_vm9, %v2041_v36, %v2064_v34 }
 0xd41   :  { %3576 = vmatmul.mubr.msk.f32.vlgmr.msra.gmra.mxu0 %vm615_vm12, %v2092_v35 }
 0xd42   :  { %3622 = vmatpush3.msra.mxu0 %v3137_v8  ;;  %v2669_v8 = vld [vmem:[%s4896_s17] sm:$0xff] }
 0xd43   :  { %v2082_v39 = vpop.permute.xlu1 %2081  ;;  %v2080_v40 = vpop.permute.xlu0 %2079 }
 0xd44   :  { %v2094_v41 = vsel %vm422_vm10, %v2090_v56, %v2082_v39  ;;  %v2093_v42 = vsel %vm422_vm10, %v2089_v38, %v2080_v40 }
 0xd45   :  { %3578 = vmatprep.mubr.msk.f32.mxu0 %vm615_vm12, %v2093_v42 }
 0xd46   :  { %3579 = vmatmul.mubr.msk.f32.gmra.mxu0 %vm615_vm12, %v2094_v41 }
 0xe01   :  { %v3577_v44 = vpop.f32.mrf.mxu0 }
 0xe02   :  { %v2193_v47 = vmax.f32 %v3577_v44, 0.0 }
 0xe03   :  { %v2173_v45 = vpop.f32.mrf.mxu0 }
 0xe04   :  { %v2192_v46 = vmax.f32 %v2173_v45, 0.0 }
 0xe06   :  { %v3580_v48 = vpop.f32.mrf.mxu0  ;;  %3585 = vmatprep.mubr.msk.f32.mxu1 %vm392_vm7, %v2192_v46 }
 0xe07   :  { %3586 = vmatmul.mubr.msk.f32.vlgmr.msra.gmra.mxu1 %vm392_vm7, %v2193_v47  ;;  %v2195_v52 = vmax.f32 %v3580_v48, 0.0 }
 0xe08   :  { %v2183_v49 = vpop.f32.mrf.mxu0  ;;  %3592 = vmatpush3.msra.mxu1 %v3131_v54 }
 0xe09   :  { %v2194_v50 = vmax.f32 %v2183_v49, 0.0  ;;  %3593 = vmatprep.subr.mxu1 %v3130_v57 }
 0xe0a   :  { %3594 = vmatpush3.msra.mxu1 %v3130_v57 }
 0xe0b   :  { %3588 = vmatprep.mubr.msk.f32.mxu1 %vm392_vm7, %v2194_v50  ;;  %3595 = vmatprep.subr.mxu1 %v3129_v17 }
 0xe0c   :  { %3589 = vmatmul.mubr.msk.f32.gmra.mxu1 %vm392_vm7, %v2195_v52 }
 0xe0d   :  { %3596 = vmatpush3.msra.mxu1 %v3129_v17 }
 0xe0e   :  { %3597 = vmatprep.subr.mxu1 %v3128_v60 }
 0xe0f   :  { %3598 = vmatpush3.msra.mxu1 %v3128_v60  ;;  %v3136_v60 = vld [vmem:[%s4895_s16 + $0x10] sm:$0xff] }
 0xe10   :  { %3599 = vmatprep.subr.mxu1 %v3127_v61  ;;  %3623 = vmatprep.subr.mxu0 %v3136_v60 }
 0xe11   :  { %3600 = vmatpush3.msra.mxu1 %v3127_v61  ;;  %3624 = vmatpush3.msra.mxu0 %v3136_v60 }
 0xe12   :  { %3601 = vmatprep.subr.mxu1 %v3126_v62 }
 0xe13   :  { %3602 = vmatpush3.msra.mxu1 %v3126_v62 }
 0xe14   :  { %3603 = vmatprep.subr.mxu1 %v3125_v63 }
 0xe15   :  { %3604 = vmatpush3.msra.mxu1 %v3125_v63 }
 0xe16   :  { %3605 = vmatprep.subr.mxu1 %v3124_v2 }
 0xe17   :  { %3606 = vmatpush3.msra.mxu1 %v3124_v2 }
 0xe18   :  { %3607 = vmatprep.subr.mxu1 %v3123_v3 }
 0xe19   :  { %3608 = vmatpush3.msra.mxu1 %v3123_v3 }
 0xe1a   :  { %3609 = vmatprep.subr.mxu1 %v3122_v6 }
 0xe1b   :  { %3610 = vmatpush3.msra.mxu1 %v3122_v6 }
 0xe1c   :  { %3611 = vmatprep.subr.mxu1 %v3121_v30 }
 0xe1d   :  { %3612 = vmatpush3.msra.mxu1 %v3121_v30 }
 0xe1e   :  { %3613 = vmatprep.subr.mxu1 %v3120_v53 }
 0xe1f   :  { %3614 = vmatpush3.msra.mxu1 %v3120_v53  ;;  %v2679_v53 = vld [vmem:[%s4896_s17 + $0x50] sm:$0xff] }
 0xec7   :  { %v3587_v31 = vpop.f32.mrf.mxu1 }
 0xec8   :  { %v4635_v7 = vadd.f32 %v3587_v31, %v4543_v55 }
 0xec9   :  { %v2276_v10 = vpop.f32.mrf.mxu1 }
 0xeca   :  { %v2300_v12 = vmax.f32 %v4635_v7, 0.0  ;;  %v4642_v14 = vadd.f32 %v2276_v10, %v4546_v58  ;;  %v2680_v10 = vld [vmem:[%s4896_s17 + $0x58] sm:$0xff] }
 0xecb   :  { %3631 = vmatprep.subr.mxu0 %v2680_v10 }
 0xecc   :  { %v2299_v15 = vmax.f32 %v4642_v14, 0.0  ;;  %2354 = vrot.lane.b32.xlu1 %v2300_v12, %s3769_s8  ;;  %v3590_v55 = vpop.f32.mrf.mxu1  ;;  %v2321_v18 = vrot.slane %v2300_v12, 7  ;;  %v2337_v23 = vrot.slane %v2300_v12, 1  ;;  %v2678_v12 = vld [vmem:[%s4896_s17 + $0x48] sm:$0xff] }
 0xecd   :  { %v4647_v16 = vadd.f32 %v3590_v55, %v4549_v1  ;;  %v2676_v55 = vld [vmem:[%s4896_s17 + $0x38] sm:$0xff] }
 0xece   :  { %v2320_v20 = vrot.slane %v2299_v15, 7  ;;  %2352 = vrot.lane.b32.xlu0 %v2299_v15, %s3769_s8  ;;  %v2286_v59 = vpop.f32.mrf.mxu1  ;;  %v2336_v22 = vrot.slane %v2299_v15, 1  ;;  %v2677_v15 = vld [vmem:[%s4896_s17 + $0x40] sm:$0xff] }
 0xecf   :  { %v2302_v58 = vmax.f32 %v4647_v16, 0.0  ;;  %v4652_v4 = vadd.f32 %v2286_v59, %v4553_v5  ;;  %v2673_v59 = vld [vmem:[%s4896_s17 + $0x20] sm:$0xff] }
 0xed0   :  { %v2338_v11 = vsel %vm327_vm2, %v2336_v22, %v2337_v23  ;;  %v2322_v1 = vsel %vm298_vm3, %v2320_v20, %v2321_v18  ;;  %v2331_v56 = vsel %vm298_vm3, 0.0, %v2320_v20  ;;  %v2674_v20 = vld [vmem:[%s4896_s17 + $0x28] sm:$0xff]  ;;  %v2672_v22 = vld [vmem:[%s4896_s17 + $0x18] sm:$0xff] }
 0xed1   :  { %v2301_v24 = vmax.f32 %v4652_v4, 0.0  ;;  %2358 = vrot.lane.b32.xlu1 %v2302_v58, %s3769_s8  ;;  %v2325_v25 = vrot.slane %v2302_v58, 7  ;;  %v2341_v26 = vrot.slane %v2302_v58, 1  ;;  %v2332_v39 = vsel %vm4010_vm6, 0.0, %v2331_v56  ;;  %v2670_v58 = vld [vmem:[%s4896_s17 + $0x8] sm:$0xff] }
 0xed2   :  { %2368 = vrot.lane.b32.xlu0 %v2338_v11, %s3771_s29 }
 0xed3   :  { %v2323_v19 = vrot.slane %v2301_v24, 7  ;;  %v2339_v5 = vrot.slane %v2301_v24, 1  ;;  %v2347_v33 = vsel %vm327_vm2, %v2341_v26, 0.0 }
 0xed4   :  { %v2351_v35 = vsel %vm3999_vm5, 0.0, %v2347_v33 }
 0xed5   :  { %v2340_v27 = vsel %vm327_vm2, %v2337_v23, %v2339_v5  ;;  %v2326_v28 = vsel %vm298_vm3, %v2323_v19, %v2325_v25  ;;  %v2324_v29 = vsel %vm298_vm3, %v2321_v18, %v2323_v19  ;;  %v2342_v34 = vsel %vm327_vm2, %v2339_v5, %v2341_v26  ;;  %v2675_v18 = vld [vmem:[%s4896_s17 + $0x30] sm:$0xff] }
 0xed6   :  { %2356 = vrot.lane.b32.xlu0 %v2301_v24, %s3769_s8  ;;  %v2349_v32 = vsel %vm3981_vm4, 0.0, %v2340_v27  ;;  %v2334_v48 = vsel %vm4020_vm11, 0.0, %v2324_v29  ;;  %v2671_v23 = vld [vmem:[%s4896_s17 + $0x10] sm:$0xff] }
 0xed7   :  { %2370 = vrot.lane.b32.xlu1 %v2349_v32, %s3771_s29 }
 0xeda   :  { %2372 = vrot.lane.b32.xlu0 %v2342_v34, %s3771_s29 }
 0xedb   :  { %2374 = vrot.lane.b32.xlu1 %v2351_v35, %s3771_s29 }
 0xf3e   :  { %v2355_v36 = vpop.permute.xlu1 %2354 }
 0xf3f   :  { %v2381_v45 = vsel %vm397_vm9, %v2322_v1, %v2355_v36 }
 0xf40   :  { %v2353_v38 = vpop.permute.xlu0 %2352 }
 0xf41   :  { %v2380_v40 = vsel %vm397_vm9, %v2332_v39, %v2353_v38 }
 0xf43   :  { %v2359_v42 = vpop.permute.xlu1 %2358 }
 0xf44   :  { %v2369_v41 = vpop.permute.xlu0 %2368  ;;  %v2383_v52 = vsel %vm397_vm9, %v2326_v28, %v2359_v42 }
 0xf45   :  { %v2384_v43 = vsel %vm422_vm10, %v2380_v40, %v2369_v41 }
 0xf46   :  { %3615 = vmatprep.mubr.msk.f32.mxu1 %vm615_vm12, %v2384_v43 }
 0xf48   :  { %v2357_v44 = vpop.permute.xlu0 %2356 }
 0xf49   :  { %v2371_v46 = vpop.permute.xlu1 %2370  ;;  %v2382_v49 = vsel %vm397_vm9, %v2334_v48, %v2357_v44 }
 0xf4a   :  { %v2385_v47 = vsel %vm422_vm10, %v2381_v45, %v2371_v46 }
 0xf4b   :  { %3616 = vmatmul.mubr.msk.f32.vlgmr.msra.gmra.mxu1 %vm615_vm12, %v2385_v47 }
 0xf4c   :  { %v2373_v50 = vpop.permute.xlu0 %2372 }
 0xf4d   :  { %v2386_v54 = vsel %vm422_vm10, %v2382_v49, %v2373_v50  ;;  %v2375_v57 = vpop.permute.xlu1 %2374 }
 0xf4e   :  { %v2387_v17 = vsel %vm422_vm10, %v2383_v52, %v2375_v57  ;;  %3618 = vmatprep.mubr.msk.f32.mxu1 %vm615_vm12, %v2386_v54 }
 0xf4f   :  { %3619 = vmatmul.mubr.msk.f32.gmra.mxu1 %vm615_vm12, %v2387_v17 }
0x100b   :  { %v3617_v61 = vpop.f32.mrf.mxu1 }
0x100c   :  { %v2486_v2 = vmax.f32 %v3617_v61, 0.0 }
0x100d   :  { %v2466_v62 = vpop.f32.mrf.mxu1 }
0x100e   :  { %v2485_v63 = vmax.f32 %v2466_v62, 0.0 }
0x100f   :  { %v3620_v3 = vpop.f32.mrf.mxu1 }
0x1010   :  { %3625 = vmatprep.mubr.msk.f32.mxu0 %vm392_vm7, %v2485_v63  ;;  %v2488_v31 = vmax.f32 %v3620_v3, 0.0 }
0x1011   :  { %v2476_v6 = vpop.f32.mrf.mxu1  ;;  %3626 = vmatmul.mubr.msk.f32.vlgmr.msra.gmra.mxu0 %vm392_vm7, %v2486_v2 }
0x1012   :  { %v2487_v30 = vmax.f32 %v2476_v6, 0.0  ;;  %3632 = vmatpush3.msra.mxu0 %v2680_v10 }
0x1013   :  { %3633 = vmatprep.subr.mxu0 %v2679_v53 }
0x1014   :  { %3628 = vmatprep.mubr.msk.f32.mxu0 %vm392_vm7, %v2487_v30  ;;  %3634 = vmatpush3.msra.mxu0 %v2679_v53 }
0x1015   :  { %3629 = vmatmul.mubr.msk.f32.gmra.mxu0 %vm392_vm7, %v2488_v31  ;;  %3635 = vmatprep.subr.mxu0 %v2678_v12 }
0x1016   :  { %3636 = vmatpush3.msra.mxu0 %v2678_v12  ;;  %v3142_v12 = vld [vmem:[%s4897_s18] ss:$0 sm:$0xff] }
0x1017   :  { %3637 = vmatprep.subr.mxu0 %v2677_v15 }
0x1018   :  { %3638 = vmatpush3.msra.mxu0 %v2677_v15  ;;  %v2880_v15 = vld [vmem:[%s4898_s19 + $0x38] sm:$0xff] }
0x1019   :  { %3639 = vmatprep.subr.mxu0 %v2676_v55  ;;  %3661 = vmatprep.subr.mxu1 %v2880_v15 }
0x101a   :  { %3640 = vmatpush3.msra.mxu0 %v2676_v55  ;;  %v2879_v55 = vld [vmem:[%s4898_s19 + $0x30] sm:$0xff]  ;;  %3662 = vmatpush3.msra.mxu1 %v2880_v15 }
0x101b   :  { %3641 = vmatprep.subr.mxu0 %v2675_v18  ;;  %3663 = vmatprep.subr.mxu1 %v2879_v55 }
0x101c   :  { %3642 = vmatpush3.msra.mxu0 %v2675_v18  ;;  %3664 = vmatpush3.msra.mxu1 %v2879_v55 }
0x101d   :  { %3643 = vmatprep.subr.mxu0 %v2674_v20 }
0x101e   :  { %3644 = vmatpush3.msra.mxu0 %v2674_v20  ;;  %v2878_v20 = vld [vmem:[%s4898_s19 + $0x28] sm:$0xff] }
0x101f   :  { %3645 = vmatprep.subr.mxu0 %v2673_v59  ;;  %3665 = vmatprep.subr.mxu1 %v2878_v20 }
0x1020   :  { %3646 = vmatpush3.msra.mxu0 %v2673_v59  ;;  %3666 = vmatpush3.msra.mxu1 %v2878_v20 }
0x1021   :  { %3647 = vmatprep.subr.mxu0 %v2672_v22 }
0x1022   :  { %3648 = vmatpush3.msra.mxu0 %v2672_v22 }
0x1023   :  { %3649 = vmatprep.subr.mxu0 %v2671_v23 }
0x1024   :  { %3650 = vmatpush3.msra.mxu0 %v2671_v23  ;;  %v2877_v23 = vld [vmem:[%s4898_s19 + $0x20] sm:$0xff] }
0x1025   :  { %3651 = vmatprep.subr.mxu0 %v2670_v58  ;;  %3667 = vmatprep.subr.mxu1 %v2877_v23 }
0x1026   :  { %3652 = vmatpush3.msra.mxu0 %v2670_v58  ;;  %3668 = vmatpush3.msra.mxu1 %v2877_v23 }
0x1027   :  { %3653 = vmatprep.subr.mxu0 %v2669_v8 }
0x1028   :  { %3654 = vmatpush3.msra.mxu0 %v2669_v8 }
0x10d1   :  { %v3627_v11 = vpop.f32.mrf.mxu0 }
0x10d2   :  { %v2590_v1 = vadd.f32 %v3627_v11, %v4635_v7  ;;  %v1795_v11 = vrot.slane %v4438_v37, 4 }
0x10d3   :  { %v2570_v24 = vpop.f32.mrf.mxu0 }
0x10d4   :  { %v2594_v25 = vmax.f32 %v2590_v1, 0.0  ;;  %v2589_v19 = vadd.f32 %v2570_v24, %v4642_v14  ;;  %v2876_v1 = vld [vmem:[%s4898_s19 + $0x18] sm:$0xff] }
0x10d5   :  { %v3630_v5 = vpop.f32.mrf.mxu0  ;;  %3669 = vmatprep.subr.mxu1 %v2876_v1 }
0x10d6   :  { %v2593_v26 = vmax.f32 %v2589_v19, 0.0  ;;  %v2592_v27 = vadd.f32 %v3630_v5, %v4647_v16  ;;  %2635 = vrot.lane.b32.xlu1 %v2594_v25, %s3769_s8  ;;  %v2618_v28 = vrot.slane %v2594_v25, 1  ;;  %v2602_v7 = vrot.slane %v2594_v25, 7  ;;  %3670 = vmatpush3.msra.mxu1 %v2876_v1 }
0x10d7   :  { %v2580_v29 = vpop.f32.mrf.mxu0 }
0x10d8   :  { %v2601_v32 = vrot.slane %v2593_v26, 7  ;;  %v2617_v33 = vrot.slane %v2593_v26, 1  ;;  %v2596_v34 = vmax.f32 %v2592_v27, 0.0  ;;  %v2591_v35 = vadd.f32 %v2580_v29, %v4652_v4  ;;  %2633 = vrot.lane.b32.xlu0 %v2593_v26, %s3769_s8  ;;  %v2875_v27 = vld [vmem:[%s4898_s19 + $0x10] sm:$0xff] }
0x10d9   :  { %3671 = vmatprep.subr.mxu1 %v2875_v27 }
0x10da   :  { %v2595_v36 = vmax.f32 %v2591_v35, 0.0  ;;  %2639 = vrot.lane.b32.xlu1 %v2596_v34, %s3769_s8  ;;  %v2619_v14 = vsel %vm327_vm2, %v2617_v33, %v2618_v28  ;;  %v2603_v56 = vsel %vm298_vm3, %v2601_v32, %v2602_v7  ;;  %v2606_v16 = vrot.slane %v2596_v34, 7  ;;  %3672 = vmatpush3.msra.mxu1 %v2875_v27 }
0x10db   :  { %v2622_v38 = vrot.slane %v2596_v34, 1  ;;  %v2612_v48 = vsel %vm298_vm3, 0.0, %v2601_v32  ;;  %v2874_v32 = vld [vmem:[%s4898_s19 + $0x8] sm:$0xff] }
0x10dc   :  { %v2604_v39 = vrot.slane %v2595_v36, 7  ;;  %v2620_v40 = vrot.slane %v2595_v36, 1  ;;  %2649 = vrot.lane.b32.xlu0 %v2619_v14, %s3771_s29  ;;  %v2613_v50 = vsel %vm4010_vm6, 0.0, %v2612_v48  ;;  %3673 = vmatprep.subr.mxu1 %v2874_v32  ;;  %v2873_v14 = vld [vmem:[%s4898_s19] sm:$0xff] }
0x10dd   :  { %v2628_v44 = vsel %vm327_vm2, %v2622_v38, 0.0  ;;  %3674 = vmatpush3.msra.mxu1 %v2874_v32 }
0x10de   :  { %v2621_v41 = vsel %vm327_vm2, %v2618_v28, %v2620_v40  ;;  %v2607_v4 = vsel %vm298_vm3, %v2604_v39, %v2606_v16  ;;  %v2605_v42 = vsel %vm298_vm3, %v2602_v7, %v2604_v39  ;;  %v2623_v45 = vsel %vm327_vm2, %v2620_v40, %v2622_v38  ;;  %3675 = vmatprep.subr.mxu1 %v2873_v14 }
0x10df   :  { %v2630_v43 = vsel %vm3981_vm4, 0.0, %v2621_v41  ;;  %v2632_v46 = vsel %vm3999_vm5, 0.0, %v2628_v44  ;;  %v2615_v2 = vsel %vm4020_vm11, 0.0, %v2605_v42  ;;  %v1796_v28 = vadd.f32 %v1795_v11, %v4438_v37  ;;  %3676 = vmatpush3.msra.mxu1 %v2873_v14 }
0x10e0   :  { %2637 = vrot.lane.b32.xlu0 %v2595_v36, %s3769_s8  ;;  %2651 = vrot.lane.b32.xlu1 %v2630_v43, %s3771_s29 }
0x10e1   :  { %v1797_v37 = vrot.slane %v1796_v28, 2 }
0x10e3   :  { %v1798_v39 = vadd.f32 %v1797_v37, %v1796_v28 }
0x10e4   :  { %2653 = vrot.lane.b32.xlu0 %v2623_v45, %s3771_s29  ;;  %2655 = vrot.lane.b32.xlu1 %v2632_v46, %s3771_s29 }
0x10e5   :  { %v1799_v44 = vrot.slane %v1798_v39, 1 }
0x1148   :  { %v2636_v47 = vpop.permute.xlu1 %2635 }
0x1149   :  { %v2662_v60 = vsel %vm397_vm9, %v2603_v56, %v2636_v47 }
0x114a   :  { %v2634_v49 = vpop.permute.xlu0 %2633 }
0x114b   :  { %v2661_v52 = vsel %vm397_vm9, %v2613_v50, %v2634_v49  ;;  %v1800_v49 = vadd.f32 %v1799_v44, %v1798_v39 }
0x114c   :  { %v2640_v54 = vpop.permute.xlu1 %2639 }
0x114d   :  { %v2664_v3 = vsel %vm397_vm9, %v2607_v4, %v2640_v54 }
0x114e   :  { %v2650_v57 = vpop.permute.xlu0 %2649 }
0x114f   :  { %v2665_v17 = vsel %vm422_vm10, %v2661_v52, %v2650_v57  ;;  %v1802_v52 = vmul.f32 0.03125, %v1800_v49 }
0x1150   :  { %3655 = vmatprep.mubr.msk.f32.mxu0 %vm615_vm12, %v2665_v17 }
0x1151   :  { %v1803_v54 = vadd.f32 1e-10, %v1802_v52 }
0x1152   :  { %v2652_v61 = vpop.permute.xlu1 %2651  ;;  %v2638_v62 = vpop.permute.xlu0 %2637 }
0x1153   :  { %v2666_v63 = vsel %vm422_vm10, %v2662_v60, %v2652_v61  ;;  %v2663_v6 = vsel %vm397_vm9, %v2615_v2, %v2638_v62  ;;  %3700 = vlog2.f32 %v1803_v54 }
0x1154   :  { %3656 = vmatmul.mubr.msk.f32.vlgmr.msra.gmra.mxu0 %vm615_vm12, %v2666_v63 }
0x1156   :  { %v2656_v30 = vpop.permute.xlu1 %2655  ;;  %v2654_v31 = vpop.permute.xlu0 %2653 }
0x1157   :  { %v2668_v10 = vsel %vm422_vm10, %v2664_v3, %v2656_v30  ;;  %v2667_v53 = vsel %vm422_vm10, %v2663_v6, %v2654_v31 }
0x1158   :  { %3658 = vmatprep.mubr.msk.f32.mxu0 %vm615_vm12, %v2667_v53 }
0x1159   :  { %3659 = vmatmul.mubr.msk.f32.gmra.mxu0 %vm615_vm12, %v2668_v10  ;;  %vm1807_vm12 = vcmask 516096  }
0x1160   :  { %v3701_v57 = vpop.eup %3700 }
0x1161   :  { %v1805_v17 = vmul.f32 0.6931472, %v3701_v57 }
0x1163   :  { %v1806_v60 = vmul.f32 %v1805_v17, %v1802_v52 }
0x1165   :  { %v1808_v51 = vsel %vm1807_vm12, %v1806_v60, 0.0 }
0x1214   :  { %v3657_v18 = vpop.f32.mrf.mxu0 }
0x1215   :  { %v2772_v59 = vadd.f32 %v3657_v18, %v3142_v12 }
0x1216   :  { %v2766_v22 = vpop.f32.mrf.mxu0 }
0x1217   :  { %v2786_v58 = vmax.f32 %v2772_v59, 0.0  ;;  %v2767_v8 = vadd.f32 %v3142_v12, %v2766_v22 }
0x1219   :  { %v2785_v24 = vmax.f32 %v2767_v8, 0.0  ;;  %2835 = vrot.lane.b32.xlu1 %v2786_v58, %s3768_s4  ;;  %v3660_v25 = vpop.f32.mrf.mxu0  ;;  %v2794_v33 = vrot.slane %v2786_v58, 7  ;;  %v2818_v56 = vrot.slane %v2786_v58, 1 }
0x121a   :  { %v2782_v19 = vadd.f32 %v3660_v25, %v3142_v12 }
0x121b   :  { %v2776_v5 = vpop.f32.mrf.mxu0  ;;  %v2793_v26 = vrot.slane %v2785_v24, 7  ;;  %v2817_v35 = vrot.slane %v2785_v24, 1 }
0x121c   :  { %v2777_v29 = vadd.f32 %v3142_v12, %v2776_v5  ;;  %v2788_v34 = vmax.f32 %v2782_v19, 0.0 }
0x121d   :  { %2833 = vrot.lane.b32.xlu1 %v2785_v24, %s3768_s4  ;;  %2800 = vrot.lane.b32.xlu0 %v2793_v26, %s3773_s15  ;;  %v2795_v36 = vsel %vm298_vm3, %v2793_v26, %v2794_v33  ;;  %v2819_v38 = vsel %vm327_vm2, %v2817_v35, %v2818_v56 }
0x121e   :  { %v2787_v7 = vmax.f32 %v2777_v29, 0.0  ;;  %v2822_v41 = vrot.slane %v2788_v34, 1  ;;  %v2798_v4 = vrot.slane %v2788_v34, 7 }
0x1220   :  { %v2796_v16 = vrot.slane %v2787_v7, 7  ;;  %v2820_v40 = vrot.slane %v2787_v7, 1  ;;  %v2828_v46 = vsel %vm327_vm2, %v2822_v41, 0.0 }
0x1221   :  { %2802 = vrot.lane.b32.xlu0 %v2795_v36, %s3773_s15  ;;  %2839 = vrot.lane.b32.xlu1 %v2788_v34, %s3768_s4  ;;  %v2832_v48 = vsel %vm3999_vm5, 0.0, %v2828_v46 }
0x1222   :  { %v2799_v42 = vsel %vm298_vm3, %v2796_v16, %v2798_v4  ;;  %v2797_v43 = vsel %vm298_vm3, %v2794_v33, %v2796_v16  ;;  %v2821_v45 = vsel %vm327_vm2, %v2818_v56, %v2820_v40  ;;  %v2823_v50 = vsel %vm327_vm2, %v2820_v40, %v2822_v41 }
0x1223   :  { %v2830_v47 = vsel %vm3981_vm4, 0.0, %v2821_v45  ;;  %vm1786_vm2 = vcmask 0  }
0x1225   :  { %2849 = vrot.lane.b32.xlu0 %v2819_v38, %s3770_s5  ;;  %2837 = vrot.lane.b32.xlu1 %v2787_v7, %s3768_s4  ;;  %s3774_s4 = smov [#allocation2]  }
0x1229   :  { %2806 = vrot.lane.b32.xlu0 %v2799_v42, %s3773_s15  ;;  %2804 = vrot.lane.b32.xlu1 %v2797_v43, %s3773_s15 }
0x122d   :  { %2851 = vrot.lane.b32.xlu0 %v2830_v47, %s3770_s5  ;;  %2855 = vrot.lane.b32.xlu1 %v2832_v48, %s3770_s5 }
0x1231   :  { %2853 = vrot.lane.b32.xlu0 %v2823_v50, %s3770_s5  ;;  %s2997_s5 = sshll.u32 %s3774_s4, 4  ;;  %s2998_s5 = int_to_ptr.vmem [resolvable:$true] %s2997_s5 }
0x1232   :  { %s3704_s17 = scalar_lea.vmem %s2998_s5, 16  ;;  %s3708_s8 = scalar_lea.vmem %s2998_s5, 32 }
0x1233   :  { %p3705_p0 = scmp.ne.s32.totalorder %s2998_s5, %s3704_s17  ;;  %p3709_p1 = scmp.lt.s32.totalorder %s2998_s5, %s2998_s5 }
0x1234   :  { %p3710_p2 = scmp.lt.s32.totalorder %s3708_s8, %s3704_s17 }
0x1236   :  { %p3711_p3 = por %p3710_p2, %p3709_p1 }
0x1238   :  { %p3712_p4 = pnand %p3711_p3, %p3705_p0 }
0x1250   :  { %1772 = vadd.xlane.f32.xlu0 %v4478_v13 }
0x1251   :  { %1809 = vadd.xlane.f32.xlu1 %v1808_v51 }
0x128b   :  { %v2836_v0 = vpop.permute.xlu1 %2835 }
0x128f   :  { %v2834_v61 = vpop.permute.xlu1 %2833  ;;  %v2801_v62 = vpop.permute.xlu0 %2800 }
0x1290   :  { %v2812_v63 = vsel %vm298_vm3, 0.0, %v2801_v62 }
0x1291   :  { %v2813_v2 = vsel %vm4010_vm6, 0.0, %v2812_v63 }
0x1292   :  { %v2861_v30 = vsel %vm392_vm7, %v2813_v2, %v2834_v61 }
0x1293   :  { %v2840_v3 = vpop.permute.xlu1 %2839  ;;  %v2803_v6 = vpop.permute.xlu0 %2802  ;;  %v2865_v10 = vsel %vm397_vm9, %v2861_v30, %v2834_v61 }
0x1294   :  { %v2862_v55 = vsel %vm392_vm7, %v2803_v6, %v2836_v0 }
0x1295   :  { %v2866_v18 = vsel %vm397_vm9, %v2862_v55, %v2836_v0 }
0x1297   :  { %v2838_v31 = vpop.permute.xlu1 %2837  ;;  %v2850_v53 = vpop.permute.xlu0 %2849 }
0x1298   :  { %v2869_v13 = vsel %vm402_vm8, %v2865_v10, %v2850_v53 }
0x1299   :  { %3677 = vmatprep.mubr.msk.f32.mxu1 %vm422_vm10, %v2869_v13 }
0x129b   :  { %v2805_v12 = vpop.permute.xlu1 %2804  ;;  %v2807_v15 = vpop.permute.xlu0 %2806 }
0x129c   :  { %v2815_v9 = vsel %vm4020_vm11, 0.0, %v2805_v12  ;;  %v2864_v23 = vsel %vm392_vm7, %v2807_v15, %v2840_v3 }
0x129d   :  { %v2863_v59 = vsel %vm392_vm7, %v2815_v9, %v2838_v31  ;;  %v2868_v1 = vsel %vm397_vm9, %v2864_v23, %v2840_v3 }
0x129e   :  { %v2867_v8 = vsel %vm397_vm9, %v2863_v59, %v2838_v31 }
0x129f   :  { %v2852_v20 = vpop.permute.xlu0 %2851  ;;  %v2856_v58 = vpop.permute.xlu1 %2855 }
0x12a0   :  { %v2870_v22 = vsel %vm402_vm8, %v2866_v18, %v2852_v20  ;;  %v2872_v24 = vsel %vm402_vm8, %v2868_v1, %v2856_v58 }
0x12a1   :  { %3678 = vmatmul.mubr.msk.f32.vlgmr.msra.gmra.mxu1 %vm422_vm10, %v2870_v22 }
0x12a3   :  { %v2854_v11 = vpop.permute.xlu0 %2853 }
0x12a4   :  { %v2871_v21 = vsel %vm402_vm8, %v2867_v8, %v2854_v11 }
0x12a5   :  { %3680 = vmatprep.mubr.msk.f32.mxu1 %vm422_vm10, %v2871_v21 }
0x12a6   :  { %3681 = vmatmul.mubr.msk.f32.gmra.mxu1 %vm422_vm10, %v2872_v24 }
0x12d9   :  { %v1773_v25 = vpop.xlane.xlu0 %1772 }
0x12da   :  { %v1774_v19 = vrot.slane %v1773_v25, 4  ;;  %v1810_v5 = vpop.xlane.xlu1 %1809 }
0x12db   :  { %v1811_v26 = vrot.slane %v1810_v5, 4 }
0x12dc   :  { %v1775_v27 = vadd.f32 %v1774_v19, %v1773_v25 }
0x12dd   :  { %v1812_v28 = vadd.f32 %v1811_v26, %v1810_v5 }
0x12de   :  { %v1776_v29 = vrot.slane %v1775_v27, 2 }
0x12df   :  { %v1813_v32 = vrot.slane %v1812_v28, 2 }
0x12e0   :  { %v1777_v33 = vadd.f32 %v1776_v29, %v1775_v27 }
0x12e1   :  { %v1814_v34 = vadd.f32 %v1813_v32, %v1812_v28 }
0x12e2   :  { %v1778_v35 = vrot.slane %v1777_v33, 1 }
0x12e3   :  { %v1815_v7 = vrot.slane %v1814_v34, 1 }
0x12e4   :  { %v1779_v36 = vadd.f32 %v1778_v35, %v1777_v33 }
0x12e5   :  { %v1816_v37 = vadd.f32 %v1815_v7, %v1814_v34 }
0x12e6   :  { %3683 = vpush %v1779_v36 }
0x12e7   :  { %3685 = vpush %v1816_v37 }
0x1317   :  { %s3684_s19 = spop %3683 }
0x1318   :  { %s1783_s16 = smul.f32 0.001953125, %s3684_s19  ;;  %s3686_s10 = spop %3685 }
0x1319   :  { %s1818_s11 = ssub.f32 0.0, %s3686_s10 }
0x131a   :  { %s1784_s14 = smul.f32 1.25, %s1783_s16 }
0x131b   :  { %v1819_v14 = vstv %s1818_s11 }
0x131c   :  { %v1820_v56 = vmul.f32 1.442695, %v1819_v14  ;;  %v1785_v16 = vstv %s1784_s14 }
0x131d   :  { %1787 = vst.msk [vmem:[#allocation2] sm:$0x1] %vm1786_vm2, %v1785_v16 }
0x131e   :  { %3702 = vpow2.f32 %v1820_v56 }
0x131f   :  { %3715 = shalt.err (!%p3712_p4)
}
0x1320   :  { %3000 = dma.vmem_to_hbm [thread:$0]  %s2998_s5, 16, %s4901_s22, [#allocation3]   ;;  %v3147_v40 = vld [vmem:[%s4899_s20] ss:$0 sm:$0xff] }
0x1321   :  { %s3775_s12 = smov [#allocation4]   ;;  %s3776_s2 = smov [#allocation6]  }
0x1322   :  { %s3007_s0 = sshll.u32 %s3775_s12, 4  ;;  %s3018_s1 = sshll.u32 %s3776_s2, 4  ;;  %s3008_s0 = int_to_ptr.vmem [resolvable:$true] %s3007_s0  ;;  %s3019_s1 = int_to_ptr.vmem [resolvable:$true] %s3018_s1 }
0x1323   :  { %s3724_s7 = scalar_lea.vmem %s3008_s0, 16  ;;  %s3728_s26 = scalar_lea.vmem %s3008_s0, 32 }
0x1324   :  { %p3725_p5 = scmp.ne.s32.totalorder %s3008_s0, %s3724_s7  ;;  %p3729_p6 = scmp.lt.s32.totalorder %s3008_s0, %s3008_s0 }
0x1325   :  { %p3730_p7 = scmp.lt.s32.totalorder %s3728_s26, %s3724_s7 }
0x1327   :  { %p3731_p8 = por %p3730_p7, %p3729_p6 }
0x1329   :  { %p3732_p9 = pnand %p3731_p8, %p3725_p5 }
0x132b   :  { %v3703_v38 = vpop.eup %3702 }
0x132c   :  { %3687 = vpush %v3703_v38 }
0x135d   :  { %s3688_s18 = spop %3687 }
0x135e   :  { %v1823_v39 = vstv %s3688_s18 }
0x135f   :  { %1824 = vst.msk [vmem:[#allocation4] sm:$0x1] %vm1786_vm2, %v1823_v39 }
0x1360   :  { %3735 = shalt.err (!%p3732_p9)
}
0x1361   :  { %3010 = dma.vmem_to_hbm [thread:$0]  %s3008_s0, 16, %s4902_s23, [#allocation5]   ;;  %v3679_v41 = vpop.f32.mrf.mxu1 }
0x1362   :  { %s3744_s15 = scalar_lea.vmem %s3019_s1, 512  ;;  %p3749_p11 = scmp.lt.s32.totalorder %s3019_s1, %s3019_s1 }
0x1363   :  { %p3745_p10 = scmp.ne.s32.totalorder %s3019_s1, %s3744_s15  ;;  %p3750_p12 = scmp.lt.s32.totalorder %s3744_s15, %s3744_s15 }
0x1365   :  { %p3751_p13 = por %p3750_p12, %p3749_p11 }
0x1367   :  { %p3752_p0 = pnand %p3751_p13, %p3745_p10 }
0x1369   :  { %3755 = shalt.err (!%p3752_p0)
}
0x136a   :  { %s3777_s20 = smov 128   ;;  %s3778_s28 = smov 8   ;;  %v2972_v4 = vadd.f32 %v3679_v41, %v3147_v40  ;;  %v2966_v42 = vpop.f32.mrf.mxu1 }
0x136b   :  { %3024 = dma.vmem_to_hbm [thread:$0]  %s3019_s1, 512, %s4904_s25, [#allocation5], %s3777_s20, %s3777_s20, %s3778_s28   ;;  %v2967_v43 = vadd.f32 %v3147_v40, %v2966_v42 }
0x136c   :  { %2986 = vst.msk [vmem:[%s4900_s21 + $0x8] sm:$0xff] %vm152_vm1, %v2972_v4  ;;  %v3682_v44 = vpop.f32.mrf.mxu1 }
0x136d   :  { %2985 = vst.msk [vmem:[%s4900_s21] sm:$0xff] %vm152_vm1, %v2967_v43  ;;  %v2982_v45 = vadd.f32 %v3682_v44, %v3147_v40 }
0x136e   :  { %v2976_v46 = vpop.f32.mrf.mxu1 }
0x136f   :  { %2988 = vst.msk [vmem:[%s4900_s21 + $0x18] sm:$0xff] %vm152_vm1, %v2982_v45  ;;  %v2977_v47 = vadd.f32 %v3147_v40, %v2976_v46 }
0x1371   :  { %2987 = vst.msk [vmem:[%s4900_s21 + $0x10] sm:$0xff] %vm152_vm1, %v2977_v47 }
0x1372   :  { %3764 = dma.done.wait [#allocation3], 16  }
0x1373   :  { %3765 = vsyncadd [#allocation3], 4294967280 }
0x1374   :  { %3766 = dma.done.wait [#allocation5], 528  }
0x1375   :  { %3767 = vsyncadd [#allocation5], 4294966768 }
0x1376   :  { %3038 = vsyncpa [#allocation3], 1 }
0x1377   :  { %3039 = vsyncpa [#allocation5], 1 }

</bundles_post_ra>
